<compile_context>
chip_gen: v6e
topology: v6e:2x2x1
jax: 0.10.0
libtpu: 0.0.40
codegen_flags: <defaults>
</compile_context>

<pallas_src>
import jax
import jax.numpy as jnp
from jax.experimental import pallas as pl
from jax.experimental.pallas import tpu as pltpu

_PRECISION = jax.lax.Precision.HIGHEST


def _critic_kernel(xt_ref, w1t_ref, b1t_ref, w2t_ref, b2t_ref, out_ref):
    """One batch tile (transposed): fused twin-head MLP, (2, TB) lane-dense out."""
    # Fused first layer: both heads in one K=(state_dim+action_dim) MXU pass.
    h = jnp.dot(w1t_ref[...], xt_ref[...],
                preferred_element_type=jnp.float32,
                precision=_PRECISION)                        # (256, TB)
    h = jnp.maximum(h + b1t_ref[...], 0.0)                   # bias + ReLU (VPU)

    # Fused second layer: block-diagonal W2^T (2, 256) -> lane-dense (2, TB).
    q = jnp.dot(w2t_ref[...], h,
                preferred_element_type=jnp.float32,
                precision=_PRECISION)                        # (2, TB)
    out_ref[...] = q + b2t_ref[...]


def fuse_critic_params(params):
    """One-time fusion of per-head PyTorch-style params into transposed kernel form."""
    w1_q1, w1_q2 = params["q1"]["w1"], params["q2"]["w1"]    # (D, 128) each
    D, H = w1_q1.shape

    # Fused, transposed first layer: (2H, D) weight, (2H, 1) bias.
    w1_t = jnp.concatenate([w1_q1, w1_q2], axis=1).T                          # (256, D)
    b1_t = jnp.concatenate([params["q1"]["b1"], params["q2"]["b1"]], axis=1).T  # (256, 1)

    # Block-diagonal, transposed second layer: (2, 2H) weight, (2, 1) bias.
    w2_t = jnp.zeros((2, 2 * H), jnp.float32)
    w2_t = w2_t.at[0, :H].set(params["q1"]["w2"][:, 0])
    w2_t = w2_t.at[1, H:].set(params["q2"]["w2"][:, 0])
    b2_t = jnp.concatenate([params["q1"]["b2"], params["q2"]["b2"]], axis=1).T  # (2, 1)

    return {"w1_t": w1_t, "b1_t": b1_t, "w2_t": w2_t, "b2_t": b2_t}


def _batch_tile(batch):
    """Batch-tile (lane) size.

    * whole batch when small (single grid step);
    * at least 2 steps once B >= 512 so v7x's two TensorCores both get work;
    * multiples of 256 lanes, capped at 2048 rows: the double-buffered tile
      footprint stays at a few MiB, safe for v5e (16 MiB scoped VMEM) and v7x
      (32 MiB scoped / 64 MiB physical).
    """
    if batch < 512:
        return batch
    half = pl.cdiv(batch, 2)
    tb = pl.cdiv(half, 256) * 256
    return min(tb, 2048)


def critic_forward(state, action, fused_params):
    """Pallas forward: returns (q1, q2), each (B, 1) f32."""
    state = state.astype(jnp.float32)
    action = action.astype(jnp.float32)
    B = state.shape[0]

    # Layout plumbing only (not compute hoisting): present the kernel with a
    # lane-dense transposed input x^T of shape (D, B).
    x_t = jnp.concatenate([state, action], axis=1).T         # (D, B)
    D = x_t.shape[0]

    w1_t = fused_params["w1_t"]                               # (256, D)
    b1_t = fused_params["b1_t"]                               # (256, 1)
    w2_t = fused_params["w2_t"]                               # (2, 256)
    b2_t = fused_params["b2_t"]                               # (2, 1)
    H2 = w1_t.shape[0]                                        # 256

    TB = _batch_tile(B)
    grid = (pl.cdiv(B, TB),)

    out = pl.pallas_call(
        _critic_kernel,
        out_shape=jax.ShapeDtypeStruct((2, B), jnp.float32),
        grid_spec=pltpu.PrefetchScalarGridSpec(
            num_scalar_prefetch=0,
            grid=grid,
            in_specs=[
                pl.BlockSpec((D, TB), lambda i: (0, i)),      # x^T batch tile
                pl.BlockSpec((H2, D), lambda i: (0, 0)),      # W1^T (resident)
                pl.BlockSpec((H2, 1), lambda i: (0, 0)),      # b1
                pl.BlockSpec((2, H2), lambda i: (0, 0)),      # W2^T (block-diag)
                pl.BlockSpec((2, 1), lambda i: (0, 0)),       # b2
            ],
            out_specs=pl.BlockSpec((2, TB), lambda i: (0, i)),
        ),
        compiler_params=pltpu.CompilerParams(
            dimension_semantics=("parallel",)),
    )(x_t, w1_t, b1_t, w2_t, b2_t)

    q1 = out[0].reshape(B, 1)
    q2 = out[1].reshape(B, 1)
    return q1, q2


critic_forward = jax.jit(critic_forward)


def init_critic_params(key, state_dim, action_dim, hidden=128):
    """Init mirroring torch.nn.Linear defaults (uniform +-1/sqrt(fan_in)).

    Weights stored as (in_features, out_features); biases as (1, out_features).
    """
    in_dim = state_dim + action_dim
    keys = jax.random.split(key, 8)

    def linear(kw, kb, fan_in, fan_out):
        bound = 1.0 / jnp.sqrt(jnp.float32(fan_in))
        w = jax.random.uniform(kw, (fan_in, fan_out), jnp.float32, -bound, bound)
        b = jax.random.uniform(kb, (1, fan_out), jnp.float32, -bound, bound)
        return w, b

    w1_q1, b1_q1 = linear(keys[0], keys[1], in_dim, hidden)
    w2_q1, b2_q1 = linear(keys[2], keys[3], hidden, 1)
    w1_q2, b1_q2 = linear(keys[4], keys[5], in_dim, hidden)
    w2_q2, b2_q2 = linear(keys[6], keys[7], hidden, 1)

    return {
        "q1": {"w1": w1_q1, "b1": b1_q1, "w2": w2_q1, "b2": b2_q1},
        "q2": {"w1": w1_q2, "b1": b1_q2, "w2": w2_q2, "b2": b2_q2},
    }


def critic_forward_ref(state, action, params):
    """Pure-JAX reference (mirrors the PyTorch forward exactly, f32)."""
    x = jnp.concatenate([state, action], axis=1)

    def head(p):
        h = jnp.maximum(
            jnp.dot(x, p["w1"], precision=_PRECISION) + p["b1"], 0.0)
        return jnp.dot(h, p["w2"], precision=_PRECISION) + p["b2"]

    return head(params["q1"]), head(params["q2"])


if __name__ == "__main__":
    key = jax.random.PRNGKey(0)
    k_param, k_state, k_action = jax.random.split(key, 3)

    batch = 8
    state_dim = 16
    action_dim = 4

    params = init_critic_params(k_param, state_dim, action_dim)
    fused = fuse_critic_params(params)          # one-time weight preprocessing

    state = jax.random.normal(k_state, (batch, state_dim), jnp.float32)
    action = jax.random.normal(k_action, (batch, action_dim), jnp.float32)

    q1, q2 = critic_forward(state, action, fused)
    jax.block_until_ready((q1, q2))

    q1_ref, q2_ref = critic_forward_ref(state, action, params)
    assert q1.shape == (batch, 1) and q2.shape == (batch, 1)
    assert jnp.allclose(q1, q1_ref, atol=1e-5, rtol=1e-5)
    assert jnp.allclose(q2, q2_ref, atol=1e-5, rtol=1e-5)

    # Multi-tile path (partial last tile, >=2 grid steps) — still small shapes.
    batch2 = 600
    k_s2, k_a2 = jax.random.split(jax.random.PRNGKey(1))
    state2 = jax.random.normal(k_s2, (batch2, state_dim), jnp.float32)
    action2 = jax.random.normal(k_a2, (batch2, action_dim), jnp.float32)
    q1b, q2b = critic_forward(state2, action2, fused)
    jax.block_until_ready((q1b, q2b))
    q1b_ref, q2b_ref = critic_forward_ref(state2, action2, params)
    assert jnp.allclose(q1b, q1b_ref, atol=1e-5, rtol=1e-5)
    assert jnp.allclose(q2b, q2b_ref, atol=1e-5, rtol=1e-5)

    print("KERNEL_OK")
</pallas_src>

<mosaic_0001>
module attributes {stable_mosaic.version = 11 : i64} {
  func.func @_critic_kernel(%arg0: i32, %arg1: memref<20x8xf32, #tpu.memory_space<vmem>>, %arg2: memref<256x20xf32, #tpu.memory_space<vmem>>, %arg3: memref<256x1xf32, #tpu.memory_space<vmem>>, %arg4: memref<2x256xf32, #tpu.memory_space<vmem>>, %arg5: memref<2x1xf32, #tpu.memory_space<vmem>>, %arg6: memref<2x8xf32, #tpu.memory_space<vmem>>) attributes {dimension_semantics = [#tpu.dimension_semantics<parallel>], iteration_bounds = array<i64: 1>, scalar_prefetch = 0 : i64, scratch_operands = 0 : i64, tpu.core_type = #tpu.core_type<tc>, window_params = [{transform_indices = @transform_0, window_bounds = array<i64: 20, 8>}, {pipeline_mode = #tpu.pipeline_mode<synchronous>, transform_indices = @transform_1, window_bounds = array<i64: 256, 20>}, {pipeline_mode = #tpu.pipeline_mode<synchronous>, transform_indices = @transform_2, window_bounds = array<i64: 256, 1>}, {pipeline_mode = #tpu.pipeline_mode<synchronous>, transform_indices = @transform_3, window_bounds = array<i64: 2, 256>}, {pipeline_mode = #tpu.pipeline_mode<synchronous>, transform_indices = @transform_4, window_bounds = array<i64: 2, 1>}, {transform_indices = @transform_5, window_bounds = array<i64: 2, 8>}]} {
    %c0 = arith.constant 0 : index
    %c0_0 = arith.constant 0 : index
    %0 = vector.load %arg2[%c0, %c0_0] : memref<256x20xf32, #tpu.memory_space<vmem>>, vector<256x20xf32>
    %c0_1 = arith.constant 0 : index
    %c0_2 = arith.constant 0 : index
    %1 = vector.load %arg1[%c0_1, %c0_2] : memref<20x8xf32, #tpu.memory_space<vmem>>, vector<20x8xf32>
    %cst = arith.constant dense<0.000000e+00> : vector<256x8xf32>
    %2 = tpu.matmul %0, %1, %cst {dimension_numbers = #tpu.dot_dimension_numbers<[1], [0], [0], [1], [0, 0, 1, 1], [], []>, precision = #tpu.contract_precision<fp32>} : vector<256x20xf32>, vector<20x8xf32>, vector<256x8xf32> -> vector<256x8xf32>
    %c0_3 = arith.constant 0 : index
    %c0_4 = arith.constant 0 : index
    %3 = vector.load %arg3[%c0_3, %c0_4] : memref<256x1xf32, #tpu.memory_space<vmem>>, vector<256x1xf32>
    %4 = vector.broadcast %3 : vector<256x1xf32> to vector<256x8xf32>
    %5 = arith.addf %2, %4 : vector<256x8xf32>
    %cst_5 = arith.constant 0.000000e+00 : f32
    %6 = vector.broadcast %cst_5 : f32 to vector<256x8xf32>
    %7 = arith.maximumf %5, %6 : vector<256x8xf32>
    %c0_6 = arith.constant 0 : index
    %c0_7 = arith.constant 0 : index
    %8 = vector.load %arg4[%c0_6, %c0_7] : memref<2x256xf32, #tpu.memory_space<vmem>>, vector<2x256xf32>
    %cst_8 = arith.constant dense<0.000000e+00> : vector<2x8xf32>
    %9 = tpu.matmul %8, %7, %cst_8 {dimension_numbers = #tpu.dot_dimension_numbers<[1], [0], [0], [1], [0, 0, 1, 1], [], []>, precision = #tpu.contract_precision<fp32>} : vector<2x256xf32>, vector<256x8xf32>, vector<2x8xf32> -> vector<2x8xf32>
    %c0_9 = arith.constant 0 : index
    %c0_10 = arith.constant 0 : index
    %10 = vector.load %arg5[%c0_9, %c0_10] : memref<2x1xf32, #tpu.memory_space<vmem>>, vector<2x1xf32>
    %11 = vector.broadcast %10 : vector<2x1xf32> to vector<2x8xf32>
    %12 = arith.addf %9, %11 : vector<2x8xf32>
    %c0_11 = arith.constant 0 : index
    %c0_12 = arith.constant 0 : index
    %13 = vector.load %arg6[%c0_11, %c0_12] : memref<2x8xf32, #tpu.memory_space<vmem>>, vector<2x8xf32>
    tpu.vector_store %arg6[%c0_11, %c0_12], %12 {strides = array<i32>} : memref<2x8xf32, #tpu.memory_space<vmem>>, vector<2x8xf32>,
    return
  }
  func.func @transform_0(%arg0: i32) -> (i32, i32) {
    %c0_i32 = arith.constant 0 : i32
    %c0_i32_0 = arith.constant 0 : i32
    return %c0_i32, %arg0 : i32, i32
  }
  func.func @transform_1(%arg0: i32) -> (i32, i32) {
    %c0_i32 = arith.constant 0 : i32
    %c0_i32_0 = arith.constant 0 : i32
    %c0_i32_1 = arith.constant 0 : i32
    return %c0_i32, %c0_i32_0 : i32, i32
  }
  func.func @transform_2(%arg0: i32) -> (i32, i32) {
    %c0_i32 = arith.constant 0 : i32
    %c0_i32_0 = arith.constant 0 : i32
    %c0_i32_1 = arith.constant 0 : i32
    return %c0_i32, %c0_i32_0 : i32, i32
  }
  func.func @transform_3(%arg0: i32) -> (i32, i32) {
    %c0_i32 = arith.constant 0 : i32
    %c0_i32_0 = arith.constant 0 : i32
    %c0_i32_1 = arith.constant 0 : i32
    return %c0_i32, %c0_i32_0 : i32, i32
  }
  func.func @transform_4(%arg0: i32) -> (i32, i32) {
    %c0_i32 = arith.constant 0 : i32
    %c0_i32_0 = arith.constant 0 : i32
    %c0_i32_1 = arith.constant 0 : i32
    return %c0_i32, %c0_i32_0 : i32, i32
  }
  func.func @transform_5(%arg0: i32) -> (i32, i32) {
    %c0_i32 = arith.constant 0 : i32
    %c0_i32_0 = arith.constant 0 : i32
    return %c0_i32, %arg0 : i32, i32
  }
}

</mosaic_0001>

<bundles_post_ra>
// kernel: critic_forward.1
= control target key start
LH: loop header
LB: loop body
LE: loop exit
PB: predicated region body
PF: predicated region fallthrough
CT: control target
= control target key end

     0   :  { %vm344_vm0 = vcmask 1043456   ;;  %vm247_vm1 = vcmask 162816   ;;  %v3819_v3 = vmov 0   ;;  %vm3065_vm2 = vcmask 58368   ;;  %s5559_s0 = inlined_call_operand.vmem [shape: f32[20,8], index: 0, kind: input, shape index: {}]   ;;  %s5560_s1 = inlined_call_operand.vmem [shape: f32[256,20], index: 1, kind: input, shape index: {}]   ;;  %s5561_s2 = inlined_call_operand.vmem [shape: f32[256,1], index: 2, kind: input, shape index: {}]   ;;  %s5562_s4 = inlined_call_operand.vmem [shape: f32[2,1], index: 4, kind: input, shape index: {}]   ;;  %s5563_s3 = inlined_call_operand.vmem [shape: f32[2,256], index: 3, kind: input, shape index: {}]   ;;  %s5564_s5 = inlined_call_operand.vmem [shape: f32[2,8], index: 5, kind: output, shape index: {}]  }
   0x1   :  { %v54_v0 = vld [vmem:[%s5559_s0 + $0x10] sm:$0xf]  ;;  %v53_v1 = vld [vmem:[%s5559_s0 + $0x8] sm:$0xff]  ;;  %v52_v2 = vld [vmem:[%s5559_s0] sm:$0xff]  ;;  %3818 = vset.pattern.permute.xlu1 %v3819_v3  ;;  %3817 = vset.pattern.permute.xlu0 %v3819_v3 }
   0x2   :  { %v346_v4 = vsel %vm344_vm0, %v54_v0, 0  ;;  %v3859_v5 = vand.u32 4294901760, %v53_v1  ;;  %v3861_v6 = vand.u32 4294901760, %v52_v2  ;;  %v20_v7 = vld [vmem:[%s5560_s1] sm:$0xff]  ;;  %v21_v8 = vld [vmem:[%s5560_s1 + $0x8] sm:$0xff]  ;;  %v22_v9 = vld [vmem:[%s5560_s1 + $0x10] sm:$0xff] }
   0x3   :  { %v3872_v10 = vand.u32 4294901760, %v346_v4  ;;  %v249_v11 = vsel %vm247_vm1, %v20_v7, 0  ;;  %v252_v12 = vsel %vm247_vm1, %v21_v8, 0  ;;  %v255_v13 = vsel %vm247_vm1, %v22_v9, 0  ;;  %v23_v14 = vld [vmem:[%s5560_s1 + $0x18] sm:$0xff]  ;;  %v24_v15 = vld [vmem:[%s5560_s1 + $0x20] sm:$0xff] }
   0x4   :  { %v3883_v16 = vand.u32 4294901760, %v249_v11  ;;  %v3885_v17 = vand.u32 4294901760, %v252_v12  ;;  %v3888_v18 = vsub.f32 %v53_v1, %v3859_v5  ;;  %v3890_v19 = vand.u32 4294901760, %v255_v13  ;;  %v85_v20 = vld [vmem:[%s5561_s2 + $0xf0] sm:$0xff]  ;;  %v25_v42 = vld [vmem:[%s5560_s1 + $0x28] sm:$0xff]  ;;  %v27_v48 = vld [vmem:[%s5560_s1 + $0x38] sm:$0xff] }
   0x5   :  { %3492 = vmatprep.subr.mxu0 %v3872_v10  ;;  %v3897_v21 = vsub.f32 %v346_v4, %v3872_v10  ;;  %v3900_v22 = vsub.f32 %v52_v2, %v3861_v6  ;;  %v258_v23 = vsel %vm247_vm1, %v23_v14, 0  ;;  %v261_v24 = vsel %vm247_vm1, %v24_v15, 0  ;;  %239 = vperm.xlu1 %3818, %v85_v20   ;;  %v69_v33 = vld [vmem:[%s5561_s2 + $0x70] sm:$0xff]  ;;  %v28_v53 = vld [vmem:[%s5560_s1 + $0x40] sm:$0xff]  ;;  %v29_v54 = vld [vmem:[%s5560_s1 + $0x48] sm:$0xff] }
   0x6   :  { %5686 = vst [vmem:[#allocation2_spill] sm:$0xff] %v3883_v16  ;;  %5687 = vst [vmem:[#allocation3_spill] sm:$0xff] %v3885_v17  ;;  %3493 = vmatpush3.msra.mxu0 %v3872_v10  ;;  %v3906_v25 = vsub.f32 %v249_v11, %v3883_v16  ;;  %v3909_v26 = vsub.f32 %v252_v12, %v3885_v17  ;;  %v3912_v27 = vand.u32 4294901760, %v3888_v18  ;;  %3552 = vmatprep.mubr.f32.mxu1 %v3883_v16  ;;  %v26_v47 = vld [vmem:[%s5560_s1 + $0x30] sm:$0xff]  ;;  %v68_v4 = vld [vmem:[%s5561_s2 + $0x68] sm:$0xff] }
   0x7   :  { %5688 = vst [vmem:[#allocation4_spill] sm:$0xff] %v3890_v19  ;;  %v3915_v28 = vsub.f32 %v255_v13, %v3890_v19  ;;  %3494 = vmatprep.subr.mxu0 %v3859_v5  ;;  %v3920_v29 = vand.u32 4294901760, %v3897_v21  ;;  %v3923_v30 = vand.u32 4294901760, %v3900_v22  ;;  %v3925_v31 = vand.u32 4294901760, %v258_v23  ;;  %v30_v63 = vld [vmem:[%s5560_s1 + $0x50] sm:$0xff]  ;;  %v31_v7 = vld [vmem:[%s5560_s1 + $0x58] sm:$0xff] }
   0x8   :  { %v3927_v32 = vand.u32 4294901760, %v261_v24  ;;  %3495 = vmatpush3.msra.mxu0 %v3859_v5  ;;  %v5580_v34 = vand.u32 4294901760, %v3906_v25  ;;  %v5578_v35 = vand.u32 4294901760, %v3909_v26  ;;  %v773_v36 = vsub.f32 %v3888_v18, %v3912_v27 }
   0x9   :  { %5689 = vst [vmem:[#allocation5_spill] sm:$0xff] %v3925_v31  ;;  %v5576_v37 = vand.u32 4294901760, %v3915_v28  ;;  %3496 = vmatprep.subr.mxu0 %v3861_v6  ;;  %v766_v38 = vsub.f32 %v3897_v21, %v3920_v29  ;;  %v780_v39 = vsub.f32 %v3900_v22, %v3923_v30  ;;  %v3944_v40 = vsub.f32 %v258_v23, %v3925_v31  ;;  %v32_v23 = vld [vmem:[%s5560_s1 + $0x60] sm:$0xff] }
   0xa   :  { %5690 = vst [vmem:[#allocation6_spill] sm:$0xff] %v3927_v32  ;;  %v3947_v41 = vsub.f32 %v261_v24, %v3927_v32  ;;  %3497 = vmatpush3.msra.mxu0 %v3861_v6  ;;  %v419_v43 = vsub.f32 %v3906_v25, %v5580_v34  ;;  %v429_v44 = vsub.f32 %v3909_v26, %v5578_v35  ;;  %v774_v45 = vand.u32 4294901760, %v773_v36 }
   0xb   :  { %v439_v46 = vsub.f32 %v3915_v28, %v5576_v37  ;;  %159 = vperm.xlu1 %3818, %v69_v33   ;;  %v767_v49 = vand.u32 4294901760, %v766_v38  ;;  %v781_v50 = vand.u32 4294901760, %v780_v39  ;;  %v5575_v51 = vand.u32 4294901760, %v3944_v40  ;;  %3600 = vmatprep.subr.mxu0 %v3897_v21 }
   0xc   :  { %v5573_v52 = vand.u32 4294901760, %v3947_v41  ;;  %v420_v55 = vand.u32 4294901760, %v419_v43  ;;  %v430_v56 = vand.u32 4294901760, %v429_v44  ;;  %v264_v58 = vsel %vm247_vm1, %v25_v42, 0 }
   0xd   :  { %v440_v57 = vand.u32 4294901760, %v439_v46  ;;  %3546 = vmatprep.subr.mxu1 %v767_v49  ;;  %v449_v59 = vsub.f32 %v3944_v40, %v5575_v51  ;;  %v3984_v61 = vand.u32 4294901760, %v264_v58  ;;  %v267_v62 = vsel %vm247_vm1, %v26_v47, 0  ;;  %v41_v51 = vld [vmem:[%s5560_s1 + $0xa8] sm:$0xff] }
   0xe   :  { %v459_v60 = vsub.f32 %v3947_v41, %v5573_v52  ;;  %3498 = vmatprep.mubr.f32.mxu0 %v420_v55  ;;  %3547 = vmatpush3.msra.mxu1 %v767_v49  ;;  %v3990_v0 = vand.u32 4294901760, %v267_v62  ;;  %v270_v1 = vsel %vm247_vm1, %v27_v48, 0  ;;  %v273_v2 = vsel %vm247_vm1, %v28_v53, 0 }
   0xf   :  { %5691 = vst [vmem:[#allocation7_spill] sm:$0xff] %v3984_v61  ;;  %v276_v3 = vsel %vm247_vm1, %v29_v54, 0  ;;  %3499 = vmatmul.mubr.f32.vlgmr.msra.gmra.mxu0 %v430_v56  ;;  %3548 = vmatprep.subr.mxu1 %v774_v45  ;;  %v450_v8 = vand.u32 4294901760, %v449_v59  ;;  %v4002_v11 = vsub.f32 %v264_v58, %v3984_v61  ;;  %v4004_v12 = vand.u32 4294901760, %v270_v1  ;;  %v33_v56 = vld [vmem:[%s5560_s1 + $0x68] sm:$0xff] }
  0x10   :  { %5692 = vst [vmem:[#allocation8_spill] sm:$0xff] %v3990_v0  ;;  %v460_v9 = vand.u32 4294901760, %v459_v60  ;;  %3549 = vmatpush3.msra.mxu1 %v774_v45  ;;  %3501 = vmatprep.mubr.f32.mxu0 %v440_v57  ;;  %v4007_v13 = vsub.f32 %v267_v62, %v3990_v0  ;;  %v4009_v14 = vand.u32 4294901760, %v273_v2  ;;  %v4011_v15 = vand.u32 4294901760, %v276_v3  ;;  %v67_v45 = vld [vmem:[%s5561_s2 + $0x60] sm:$0xff] }
  0x11   :  { %5693 = vst [vmem:[#allocation9_spill] sm:$0xff] %v4004_v12  ;;  %v279_v20 = vsel %vm247_vm1, %v30_v63, 0  ;;  %3550 = vmatprep.subr.mxu1 %v781_v50  ;;  %v5572_v24 = vand.u32 4294901760, %v4002_v11  ;;  %v4019_v33 = vsub.f32 %v270_v1, %v4004_v12  ;;  %154 = vperm.xlu1 %3818, %v68_v4   ;;  %v282_v38 = vsel %vm247_vm1, %v31_v7, 0  ;;  %v66_v4 = vld [vmem:[%s5561_s2 + $0x58] sm:$0xff] }
  0x12   :  { %5694 = vst [vmem:[#allocation10_spill] sm:$0xff] %v4009_v14  ;;  %5695 = vst [vmem:[#allocation11_spill] sm:$0xff] %v4011_v15  ;;  %v4021_v36 = vand.u32 4294901760, %v279_v20  ;;  %3551 = vmatpush3.msra.mxu1 %v781_v50  ;;  %v5571_v39 = vand.u32 4294901760, %v4007_v13  ;;  %v4026_v42 = vsub.f32 %v273_v2, %v4009_v14  ;;  %v4029_v43 = vsub.f32 %v276_v3, %v4011_v15  ;;  %v86_v50 = vld [vmem:[%s5561_s2 + $0xf8] sm:$0xff]  ;;  %v34_v3 = vld [vmem:[%s5560_s1 + $0x70] sm:$0xff] }
  0x13   :  { %v4031_v44 = vand.u32 4294901760, %v282_v38  ;;  %3601 = vmatpush3.msra.mxu0 %v3897_v21  ;;  %3553 = vmatmul.mubr.f32.vlgmr.msra.gmra.mxu1 %v3885_v17  ;;  %v469_v46 = vsub.f32 %v4002_v11, %v5572_v24  ;;  %v5569_v47 = vand.u32 4294901760, %v4019_v33  ;;  %v285_v49 = vsel %vm247_vm1, %v32_v23, 0  ;;  %v35_v7 = vld [vmem:[%s5560_s1 + $0x78] sm:$0xff] }
  0x14   :  { %5696 = vst [vmem:[#allocation12_spill] sm:$0xff] %v4021_v36  ;;  %3502 = vmatmul.mubr.f32.gmra.mxu0 %v450_v8  ;;  %v4043_v48 = vsub.f32 %v279_v20, %v4021_v36  ;;  %3555 = vmatprep.mubr.f32.mxu1 %v3890_v19  ;;  %v479_v21 = vsub.f32 %v4007_v13, %v5571_v39  ;;  %v5567_v53 = vand.u32 4294901760, %v4026_v42  ;;  %v5566_v54 = vand.u32 4294901760, %v4029_v43  ;;  %v79_v19 = vld [vmem:[%s5561_s2 + $0xc0] sm:$0xff] }
  0x15   :  { %5697 = vst [vmem:[#allocation13_spill] sm:$0xff] %v4031_v44  ;;  %3504 = vmatprep.mubr.f32.mxu0 %v460_v9  ;;  %v4056_v55 = vsub.f32 %v282_v38, %v4031_v44  ;;  %v470_v57 = vand.u32 4294901760, %v469_v46  ;;  %v489_v58 = vsub.f32 %v4019_v33, %v5569_v47  ;;  %v4065_v60 = vand.u32 4294901760, %v285_v49  ;;  %149 = vperm.xlu1 %3818, %v67_v45   ;;  %v70_v38 = vld [vmem:[%s5561_s2 + $0x78] sm:$0xff]  ;;  %v84_v47 = vld [vmem:[%s5561_s2 + $0xe8] sm:$0xff] }
  0x16   :  { %v5565_v59 = vand.u32 4294901760, %v4043_v48  ;;  %3654 = vmatprep.subr.mxu1 %v3872_v10  ;;  %v480_v62 = vand.u32 4294901760, %v479_v21  ;;  %v499_v63 = vsub.f32 %v4026_v42, %v5567_v53  ;;  %v4074_v1 = vsub.f32 %v4029_v43, %v5566_v54  ;;  %244 = vperm.xlu0 %3817, %v86_v50   ;;  %v36_v21 = vld [vmem:[%s5560_s1 + $0x80] sm:$0xff] }
  0x17   :  { %5698 = vst [vmem:[#allocation14_spill] sm:$0xff] %v4065_v60  ;;  %v5568_v2 = vand.u32 4294901760, %v4056_v55  ;;  %3655 = vmatpush3.msra.mxu1 %v3872_v10  ;;  %v490_v8 = vand.u32 4294901760, %v489_v58  ;;  %v4092_v20 = vsub.f32 %v285_v49, %v4065_v60  ;;  %v288_v23 = vsel %vm247_vm1, %v33_v56, 0  ;;  %v37_v49 = vld [vmem:[%s5560_s1 + $0x88] sm:$0xff]  ;;  %v38_v56 = vld [vmem:[%s5560_s1 + $0x90] sm:$0xff]  ;;  %3602 = vmatprep.subr.mxu0 %v3888_v18 }
  0x18   :  { %3505 = vmatmul.mubr.f32.gmra.mxu0 %v470_v57  ;;  %3556 = vmatmul.mubr.f32.gmra.mxu1 %v3925_v31  ;;  %v519_v9 = vsub.f32 %v4043_v48, %v5565_v59  ;;  %v500_v45 = vand.u32 4294901760, %v499_v63  ;;  %v510_v46 = vand.u32 4294901760, %v4074_v1  ;;  %v4100_v50 = vand.u32 4294901760, %v288_v23 }
  0x19   :  { %3507 = vmatprep.mubr.f32.mxu0 %v480_v62  ;;  %3558 = vmatprep.mubr.f32.mxu1 %v3927_v32  ;;  %v4114_v57 = vsub.f32 %v4056_v55, %v5568_v2  ;;  %v5570_v58 = vand.u32 4294901760, %v4092_v20  ;;  %v291_v62 = vsel %vm247_vm1, %v34_v3, 0  ;;  %v294_v63 = vsel %vm247_vm1, %v35_v7, 0  ;;  %v65_v2 = vld [vmem:[%s5561_s2 + $0x50] sm:$0xff]  ;;  %v39_v3 = vld [vmem:[%s5560_s1 + $0x98] sm:$0xff]  ;;  %v80_v32 = vld [vmem:[%s5561_s2 + $0xc8] sm:$0xff] }
  0x1a   :  { %5699 = vst [vmem:[#allocation15_spill] sm:$0xff] %v4100_v50  ;;  %144 = vperm.xlu1 %3818, %v66_v4   ;;  %v520_v1 = vand.u32 4294901760, %v519_v9  ;;  %v4121_v59 = vsub.f32 %v288_v23, %v4100_v50  ;;  %v4123_v54 = vand.u32 4294901760, %v291_v62  ;;  %v4125_v53 = vand.u32 4294901760, %v294_v63  ;;  %164 = vperm.xlu0 %3817, %v70_v38  }
  0x1b   :  { %3603 = vmatpush3.msra.mxu0 %v3888_v18  ;;  %v539_v4 = vsub.f32 %v4092_v20, %v5570_v58  ;;  %v297_v7 = vsel %vm247_vm1, %v36_v21, 0  ;;  %v300_v9 = vsel %vm247_vm1, %v37_v49, 0  ;;  %v303_v23 = vsel %vm247_vm1, %v38_v56, 0  ;;  %v40_v49 = vld [vmem:[%s5560_s1 + $0xa0] sm:$0xff]  ;;  %3656 = vmatprep.subr.mxu1 %v3859_v5 }
  0x1c   :  { %5700 = vst [vmem:[#allocation16_spill] sm:$0xff] %v4123_v54  ;;  %5701 = vst [vmem:[#allocation17_spill] sm:$0xff] %v4125_v53  ;;  %3508 = vmatmul.mubr.f32.gmra.mxu0 %v490_v8  ;;  %3559 = vmatmul.mubr.f32.gmra.mxu1 %v3984_v61  ;;  %v5574_v18 = vand.u32 4294901760, %v4121_v59  ;;  %v4147_v8 = vsub.f32 %v291_v62, %v4123_v54  ;;  %v4150_v38 = vsub.f32 %v294_v63, %v4125_v53  ;;  %v47_v61 = vld [vmem:[%s5560_s1 + $0xd8] sm:$0xff] }
  0x1d   :  { %3510 = vmatprep.mubr.f32.mxu0 %v500_v45  ;;  %3561 = vmatprep.mubr.f32.mxu1 %v3990_v0  ;;  %v4152_v21 = vand.u32 4294901760, %v297_v7  ;;  %v530_v56 = vand.u32 4294901760, %v4114_v57  ;;  %v4158_v45 = vand.u32 4294901760, %v300_v9  ;;  %v4160_v58 = vand.u32 4294901760, %v303_v23  ;;  %v81_v0 = vld [vmem:[%s5561_s2 + $0xd0] sm:$0xff] }
  0x1e   :  { %139 = vperm.xlu1 %3818, %v65_v2   ;;  %v306_v39 = vsel %vm247_vm1, %v39_v3, 0  ;;  %v549_v62 = vsub.f32 %v4121_v59, %v5574_v18  ;;  %v5577_v63 = vand.u32 4294901760, %v4147_v8  ;;  %v5579_v24 = vand.u32 4294901760, %v4150_v38  ;;  %v64_v2 = vld [vmem:[%s5561_s2 + $0x48] sm:$0xff]  ;;  %234 = vperm.xlu0 %3817, %v84_v47   ;;  %v83_v47 = vld [vmem:[%s5561_s2 + $0xe0] sm:$0xff] }
  0x1f   :  { %5702 = vst [vmem:[#allocation18_spill] sm:$0xff] %v4152_v21  ;;  %5703 = vst [vmem:[#allocation19_spill] sm:$0xff] %v4160_v58  ;;  %v4170_v52 = vsub.f32 %v297_v7, %v4152_v21  ;;  %3657 = vmatpush3.msra.mxu1 %v3859_v5  ;;  %v4178_v57 = vsub.f32 %v300_v9, %v4158_v45  ;;  %v4181_v3 = vsub.f32 %v303_v23, %v4160_v58 }
  0x20   :  { %3511 = vmatmul.mubr.f32.gmra.mxu0 %v510_v46  ;;  %3562 = vmatmul.mubr.f32.gmra.mxu1 %v4004_v12  ;;  %v4183_v18 = vand.u32 4294901760, %v306_v39  ;;  %v309_v7 = vsel %vm247_vm1, %v40_v49, 0  ;;  %v540_v46 = vand.u32 4294901760, %v539_v4  ;;  %v559_v9 = vsub.f32 %v4147_v8, %v5577_v63  ;;  %v43_v4 = vld [vmem:[%s5560_s1 + $0xb8] sm:$0xff] }
  0x21   :  { %3513 = vmatprep.mubr.f32.mxu0 %v520_v1  ;;  %3564 = vmatprep.mubr.f32.mxu1 %v4009_v14  ;;  %v5583_v23 = vand.u32 4294901760, %v4170_v52  ;;  %v569_v49 = vsub.f32 %v4150_v38, %v5579_v24  ;;  %v4200_v37 = vand.u32 4294901760, %v309_v7  ;;  %v42_v1 = vld [vmem:[%s5560_s1 + $0xb0] sm:$0xff]  ;;  %v550_v63 = vand.u32 4294901760, %v549_v62  ;;  %v63_v24 = vld [vmem:[%s5561_s2 + $0x40] sm:$0xff] }
  0x22   :  { %134 = vperm.xlu1 %3818, %v64_v2   ;;  %3604 = vmatprep.subr.mxu0 %v3900_v22  ;;  %v312_v2 = vsel %vm247_vm1, %v41_v51, 0  ;;  %v560_v34 = vand.u32 4294901760, %v559_v9  ;;  %v4221_v35 = vsub.f32 %v306_v39, %v4183_v18  ;;  %v44_v51 = vld [vmem:[%s5560_s1 + $0xc0] sm:$0xff]  ;;  %v315_v9 = vsel %vm247_vm1, %v42_v1, 0 }
  0x23   :  { %5704 = vst [vmem:[#allocation20_spill] sm:$0xff] %v4200_v37  ;;  %229 = vperm.xlu0 %3817, %v83_v47   ;;  %3605 = vmatpush3.msra.mxu0 %v3900_v22  ;;  %v579_v14 = vsub.f32 %v4170_v52, %v5583_v23  ;;  %v82_v22 = vld [vmem:[%s5561_s2 + $0xd8] sm:$0xff]  ;;  %v4233_v47 = vand.u32 4294901760, %v312_v2  ;;  %v318_v39 = vsel %vm247_vm1, %v43_v4, 0  ;;  %v45_v23 = vld [vmem:[%s5560_s1 + $0xc8] sm:$0xff]  ;;  %v570_v62 = vand.u32 4294901760, %v569_v49 }
  0x24   :  { %3514 = vmatmul.mubr.f32.gmra.mxu0 %v530_v56  ;;  %3565 = vmatmul.mubr.f32.gmra.mxu1 %v4011_v15  ;;  %v4231_v56 = vsub.f32 %v309_v7, %v4200_v37  ;;  %v62_v7 = vld [vmem:[%s5561_s2 + $0x38] sm:$0xff]  ;;  %v4249_v1 = vand.u32 4294901760, %v318_v39  ;;  %v321_v4 = vsel %vm247_vm1, %v44_v51, 0  ;;  %v46_v49 = vld [vmem:[%s5560_s1 + $0xd0] sm:$0xff]  ;;  %v324_v51 = vsel %vm247_vm1, %v45_v23, 0 }
  0x25   :  { %3516 = vmatprep.mubr.f32.mxu0 %v540_v46  ;;  %3567 = vmatprep.mubr.f32.mxu1 %v4021_v36  ;;  %v4242_v46 = vsub.f32 %v312_v2, %v4233_v47  ;;  %v4244_v36 = vand.u32 4294901760, %v315_v9  ;;  %v4261_v12 = vand.u32 4294901760, %v321_v4  ;;  %v327_v23 = vsel %vm247_vm1, %v46_v49, 0 }
  0x26   :  { %129 = vperm.xlu1 %3818, %v63_v24   ;;  %3658 = vmatprep.subr.mxu1 %v3861_v6  ;;  %v5705_v24 = vand.u32 4294901760, %v4178_v57 }
  0x27   :  { %224 = vperm.xlu0 %3817, %v82_v22   ;;  %3659 = vmatpush3.msra.mxu1 %v3861_v6  ;;  %v5706_v22 = vand.u32 4294901760, %v4181_v3  ;;  %v4273_v15 = vsub.f32 %v315_v9, %v4244_v36  ;;  %v4287_v9 = vand.u32 4294901760, %v324_v51 }
  0x28   :  { %3517 = vmatmul.mubr.f32.gmra.mxu0 %v550_v63  ;;  %3568 = vmatmul.mubr.f32.gmra.mxu1 %v4031_v44  ;;  %v589_v2 = vsub.f32 %v4178_v57, %v5705_v24  ;;  %v580_v63 = vand.u32 4294901760, %v579_v14  ;;  %v4282_v14 = vsub.f32 %v318_v39, %v4249_v1  ;;  %v5707_v39 = vand.u32 4294901760, %v4221_v35  ;;  %v49_v24 = vld [vmem:[%s5560_s1 + $0xe8] sm:$0xff] }
  0x29   :  { %3519 = vmatprep.mubr.f32.mxu0 %v560_v34  ;;  %3570 = vmatprep.mubr.f32.mxu1 %v4065_v60  ;;  %v599_v44 = vsub.f32 %v4181_v3, %v5706_v22  ;;  %v61_v22 = vld [vmem:[%s5561_s2 + $0x30] sm:$0xff]  ;;  %v4299_v60 = vsub.f32 %v321_v4, %v4261_v12  ;;  %v4320_v31 = vsub.f32 %v324_v51, %v4287_v9  ;;  %v51_v51 = vld [vmem:[%s5560_s1 + $0xf8] sm:$0xff] }
  0x2a   :  { %124 = vperm.xlu1 %3818, %v62_v7   ;;  %3708 = vmatprep.subr.mxu0 %v3920_v29  ;;  %v48_v7 = vld [vmem:[%s5560_s1 + $0xe0] sm:$0xff]  ;;  %v590_v49 = vand.u32 4294901760, %v589_v2  ;;  %v609_v34 = vsub.f32 %v4221_v35, %v5707_v39  ;;  %v330_v39 = vsel %vm247_vm1, %v47_v61, 0  ;;  %v60_v61 = vld [vmem:[%s5561_s2 + $0x28] sm:$0xff] }
  0x2b   :  { %219 = vperm.xlu0 %3817, %v81_v0   ;;  %3762 = vmatprep.subr.mxu1 %v3872_v10  ;;  %v600_v0 = vand.u32 4294901760, %v599_v44  ;;  %v333_v4 = vsel %vm247_vm1, %v48_v7, 0  ;;  %v4333_v44 = vand.u32 4294901760, %v330_v39 }
  0x2c   :  { %3520 = vmatmul.mubr.f32.gmra.mxu0 %v570_v62  ;;  %3571 = vmatmul.mubr.f32.gmra.mxu1 %v4100_v50  ;;  %v5708_v62 = vand.u32 4294901760, %v4231_v56  ;;  %v4308_v50 = vand.u32 4294901760, %v327_v23  ;;  %v610_v7 = vand.u32 4294901760, %v609_v34  ;;  %v4342_v34 = vand.u32 4294901760, %v333_v4 }
  0x2d   :  { %3522 = vmatprep.mubr.f32.mxu0 %v580_v63  ;;  %3573 = vmatprep.mubr.f32.mxu1 %v4123_v54  ;;  %v5709_v63 = vand.u32 4294901760, %v4242_v46 }
  0x2e   :  { %v619_v2 = vsub.f32 %v4231_v56, %v5708_v62  ;;  %119 = vperm.xlu1 %3818, %v61_v22   ;;  %v50_v22 = vld [vmem:[%s5560_s1 + $0xf0] sm:$0xff]  ;;  %v5710_v62 = vand.u32 4294901760, %v4273_v15 }
  0x2f   :  { %v629_v54 = vsub.f32 %v4242_v46, %v5709_v63  ;;  %214 = vperm.xlu0 %3817, %v80_v32  }
  0x30   :  { %3523 = vmatmul.mubr.f32.gmra.mxu0 %v590_v49  ;;  %3574 = vmatmul.mubr.f32.gmra.mxu1 %v4125_v53  ;;  %v639_v63 = vsub.f32 %v4273_v15, %v5710_v62  ;;  %v620_v32 = vand.u32 4294901760, %v619_v2  ;;  %v4340_v49 = vsub.f32 %v327_v23, %v4308_v50  ;;  %v336_v53 = vsel %vm247_vm1, %v49_v24, 0  ;;  %v59_v23 = vld [vmem:[%s5561_s2 + $0x20] sm:$0xff]  ;;  %v58_v2 = vld [vmem:[%s5561_s2 + $0x18] sm:$0xff] }
  0x31   :  { %3525 = vmatprep.mubr.f32.mxu0 %v600_v0  ;;  %3576 = vmatprep.mubr.f32.mxu1 %v4152_v21  ;;  %v339_v62 = vsel %vm247_vm1, %v50_v22, 0  ;;  %v630_v17 = vand.u32 4294901760, %v629_v54  ;;  %v5711_v0 = vand.u32 4294901760, %v4282_v14  ;;  %v4361_v54 = vsub.f32 %v330_v39, %v4333_v44 }
  0x32   :  { %114 = vperm.xlu1 %3818, %v60_v61   ;;  %v640_v24 = vand.u32 4294901760, %v639_v63  ;;  %v5712_v61 = vand.u32 4294901760, %v4299_v60  ;;  %v4363_v16 = vand.u32 4294901760, %v336_v53  ;;  %v4373_v63 = vand.u32 4294901760, %v339_v62 }
  0x33   :  { %v649_v21 = vsub.f32 %v4282_v14, %v5711_v0  ;;  %209 = vperm.xlu0 %3817, %v79_v19   ;;  %v78_v0 = vld [vmem:[%s5561_s2 + $0xb8] sm:$0xff] }
  0x34   :  { %3526 = vmatmul.mubr.f32.gmra.mxu0 %v610_v7  ;;  %3577 = vmatmul.mubr.f32.gmra.mxu1 %v4158_v45  ;;  %v659_v22 = vsub.f32 %v4299_v60, %v5712_v61  ;;  %v4371_v7 = vsub.f32 %v333_v4, %v4342_v34  ;;  %v342_v61 = vsel %vm247_vm1, %v51_v51, 0  ;;  %v4398_v4 = vsub.f32 %v339_v62, %v4373_v63  ;;  %v76_v62 = vld [vmem:[%s5561_s2 + $0xa8] sm:$0xff] }
  0x35   :  { %3528 = vmatprep.mubr.f32.mxu0 %v620_v32  ;;  %3579 = vmatprep.mubr.f32.mxu1 %v4160_v58  ;;  %v650_v39 = vand.u32 4294901760, %v649_v21  ;;  %v5713_v32 = vand.u32 4294901760, %v4320_v31  ;;  %v4385_v58 = vsub.f32 %v336_v53, %v4363_v16  ;;  %v4387_v51 = vand.u32 4294901760, %v342_v61  ;;  %v77_v21 = vld [vmem:[%s5561_s2 + $0xb0] sm:$0xff] }
  0x36   :  { %109 = vperm.xlu1 %3818, %v59_v23   ;;  %v5714_v23 = vand.u32 4294901760, %v4340_v49  ;;  %v57_v53 = vld [vmem:[%s5561_s2 + $0x10] sm:$0xff] }
  0x37   :  { %204 = vperm.xlu0 %3817, %v78_v0   ;;  %v669_v19 = vsub.f32 %v4320_v31, %v5713_v32  ;;  %v4409_v32 = vsub.f32 %v342_v61, %v4387_v51  ;;  %v56_v61 = vld [vmem:[%s5561_s2 + $0x8] sm:$0xff] }
  0x38   :  { %3529 = vmatmul.mubr.f32.gmra.mxu0 %v630_v17  ;;  %3580 = vmatmul.mubr.f32.gmra.mxu1 %v4183_v18  ;;  %v660_v17 = vand.u32 4294901760, %v659_v22  ;;  %v679_v0 = vsub.f32 %v4340_v49, %v5714_v23  ;;  %v5715_v22 = vand.u32 4294901760, %v4361_v54  ;;  %v708_v23 = vand.u32 4294901760, %v4385_v58 }
  0x39   :  { %3531 = vmatprep.mubr.f32.mxu0 %v640_v24  ;;  %3582 = vmatprep.mubr.f32.mxu1 %v4200_v37  ;;  %v670_v24 = vand.u32 4294901760, %v669_v19 }
  0x3a   :  { %104 = vperm.xlu1 %3818, %v58_v2   ;;  %v689_v37 = vsub.f32 %v4361_v54, %v5715_v22  ;;  %v680_v2 = vand.u32 4294901760, %v679_v0  ;;  %v728_v0 = vand.u32 4294901760, %v4409_v32 }
  0x3b   :  { %199 = vperm.xlu0 %3817, %v77_v21   ;;  %v718_v21 = vand.u32 4294901760, %v4398_v4 }
  0x3c   :  { %3532 = vmatmul.mubr.f32.gmra.mxu0 %v650_v39  ;;  %3583 = vmatmul.mubr.f32.gmra.mxu1 %v4233_v47  ;;  %v5716_v39 = vand.u32 4294901760, %v4371_v7  ;;  %v690_v22 = vand.u32 4294901760, %v689_v37  ;;  %v55_v37 = vld [vmem:[%s5561_s2] sm:$0xff] }
  0x3d   :  { %3534 = vmatprep.mubr.f32.mxu0 %v660_v17  ;;  %3585 = vmatprep.mubr.f32.mxu1 %v4244_v36  ;;  %v709_v17 = vsub.f32 %v4385_v58, %v708_v23 }
  0x3e   :  { %v699_v19 = vsub.f32 %v4371_v7, %v5716_v39  ;;  %99 = vperm.xlu1 %3818, %v57_v53   ;;  %v75_v39 = vld [vmem:[%s5561_s2 + $0xa0] sm:$0xff] }
  0x3f   :  { %194 = vperm.xlu0 %3817, %v76_v62   ;;  %v710_v62 = vand.u32 4294901760, %v709_v17  ;;  %v73_v17 = vld [vmem:[%s5561_s2 + $0x90] sm:$0xff] }
  0x40   :  { %3535 = vmatmul.mubr.f32.gmra.mxu0 %v670_v24  ;;  %3586 = vmatmul.mubr.f32.gmra.mxu1 %v4249_v1  ;;  %v700_v53 = vand.u32 4294901760, %v699_v19  ;;  %v719_v24 = vsub.f32 %v4398_v4, %v718_v21  ;;  %v74_v19 = vld [vmem:[%s5561_s2 + $0x98] sm:$0xff] }
  0x41   :  { %3537 = vmatprep.mubr.f32.mxu0 %v680_v2  ;;  %3588 = vmatprep.mubr.f32.mxu1 %v4261_v12  ;;  %v729_v2 = vsub.f32 %v4409_v32, %v728_v0 }
  0x42   :  { %94 = vperm.xlu1 %3818, %v56_v61   ;;  %v720_v61 = vand.u32 4294901760, %v719_v24  ;;  %v5717_v24 = vand.u32 4294901760, %v3906_v25 }
  0x43   :  { %189 = vperm.xlu0 %3817, %v75_v39   ;;  %v72_v39 = vld [vmem:[%s5561_s2 + $0x88] sm:$0xff] }
  0x44   :  { %3538 = vmatmul.mubr.f32.gmra.mxu0 %v690_v22  ;;  %3589 = vmatmul.mubr.f32.gmra.mxu1 %v4287_v9  ;;  %v730_v22 = vand.u32 4294901760, %v729_v2  ;;  %v5753_v2 = vld [vmem:[#allocation9_spill] sm:$0xff] }
  0x45   :  { %3540 = vmatprep.mubr.f32.mxu0 %v700_v53  ;;  %3591 = vmatprep.mubr.f32.mxu1 %v4308_v50  ;;  %v71_v53 = vld [vmem:[%s5561_s2 + $0x80] sm:$0xff] }
  0x46   :  { %89 = vperm.xlu1 %3818, %v55_v37   ;;  %v5718_v37 = vand.u32 4294901760, %v3909_v26 }
  0x47   :  { %184 = vperm.xlu0 %3817, %v74_v19   ;;  %v5754_v19 = vld [vmem:[#allocation10_spill] sm:$0xff] }
  0x48   :  { %3541 = vmatmul.mubr.f32.gmra.mxu0 %v710_v62  ;;  %3592 = vmatmul.mubr.f32.gmra.mxu1 %v4333_v44  ;;  %v5719_v62 = vand.u32 4294901760, %v3915_v28 }
  0x49   :  { %3543 = vmatprep.mubr.f32.mxu0 %v720_v61  ;;  %3594 = vmatprep.mubr.f32.mxu1 %v4342_v34 }
  0x4b   :  { %179 = vperm.xlu0 %3817, %v73_v17   ;;  %v5755_v17 = vld [vmem:[#allocation11_spill] sm:$0xff] }
  0x4c   :  { %3544 = vmatmul.mubr.f32.gmra.mxu0 %v730_v22  ;;  %3595 = vmatmul.mubr.f32.gmra.mxu1 %v4363_v16 }
  0x4d   :  { %3606 = vmatprep.mubr.f32.mxu0 %v3906_v25  ;;  %3597 = vmatprep.mubr.f32.mxu1 %v4373_v63  ;;  %v5720_v25 = vand.u32 4294901760, %v3944_v40 }
  0x4f   :  { %174 = vperm.xlu0 %3817, %v72_v39   ;;  %v5756_v39 = vld [vmem:[#allocation12_spill] sm:$0xff] }
  0x50   :  { %3607 = vmatmul.mubr.f32.vlgmr.msra.gmra.mxu0 %v3909_v26  ;;  %3598 = vmatmul.mubr.f32.gmra.mxu1 %v4387_v51  ;;  %v5721_v26 = vand.u32 4294901760, %v3947_v41 }
  0x51   :  { %3609 = vmatprep.mubr.f32.mxu0 %v3915_v28  ;;  %3660 = vmatprep.mubr.f32.mxu1 %v5717_v24  ;;  %v5725_v28 = vand.u32 4294901760, %v4026_v42 }
  0x52   :  { %3709 = vmatpush3.msra.mxu0 %v3920_v29  ;;  %v5726_v29 = vand.u32 4294901760, %v4029_v43 }
  0x53   :  { %169 = vperm.xlu0 %3817, %v71_v53   ;;  %3710 = vmatprep.subr.mxu0 %v3912_v27 }
  0x54   :  { %3610 = vmatmul.mubr.f32.gmra.mxu0 %v3944_v40  ;;  %3661 = vmatmul.mubr.f32.vlgmr.msra.gmra.mxu1 %v5718_v37  ;;  %v5729_v40 = vand.u32 4294901760, %v4092_v20  ;;  %v5757_v37 = vld [vmem:[#allocation13_spill] sm:$0xff] }
  0x55   :  { %3612 = vmatprep.mubr.f32.mxu0 %v3947_v41  ;;  %3663 = vmatprep.mubr.f32.mxu1 %v5719_v62  ;;  %v5730_v41 = vand.u32 4294901760, %v4121_v59  ;;  %v5758_v62 = vld [vmem:[#allocation14_spill] sm:$0xff] }
  0x56   :  { %3763 = vmatpush3.msra.mxu1 %v3872_v10  ;;  %3711 = vmatpush3.msra.mxu0 %v3912_v27  ;;  %v5722_v10 = vand.u32 4294901760, %v4002_v11  ;;  %v5723_v27 = vand.u32 4294901760, %v4007_v13 }
  0x57   :  { %3764 = vmatprep.subr.mxu1 %v3859_v5  ;;  %3712 = vmatprep.subr.mxu0 %v3923_v30 }
  0x58   :  { %3613 = vmatmul.mubr.f32.gmra.mxu0 %v4002_v11  ;;  %3664 = vmatmul.mubr.f32.gmra.mxu1 %v5720_v25  ;;  %v5731_v11 = vand.u32 4294901760, %v4147_v8  ;;  %v5759_v25 = vld [vmem:[#allocation15_spill] sm:$0xff] }
  0x59   :  { %3615 = vmatprep.mubr.f32.mxu0 %v4007_v13  ;;  %3666 = vmatprep.mubr.f32.mxu1 %v5721_v26  ;;  %v2186_v13 = vld [vmem:[%s5562_s4] sm:$0x3] }
  0x5a   :  { %3765 = vmatpush3.msra.mxu1 %v3859_v5  ;;  %3713 = vmatpush3.msra.mxu0 %v3923_v30  ;;  %v5724_v5 = vand.u32 4294901760, %v4019_v33  ;;  %v5727_v30 = vand.u32 4294901760, %v4043_v48 }
  0x5b   :  { %3766 = vmatprep.subr.mxu1 %v3861_v6  ;;  %2189 = vperm.xlu0 %3817, %v2186_v13  }
  0x5c   :  { %3616 = vmatmul.mubr.f32.gmra.mxu0 %v4019_v33  ;;  %3667 = vmatmul.mubr.f32.gmra.mxu1 %v5722_v10  ;;  %v5732_v33 = vand.u32 4294901760, %v4150_v38  ;;  %v5760_v10 = vld [vmem:[#allocation16_spill] sm:$0xff] }
  0x5d   :  { %3618 = vmatprep.mubr.f32.mxu0 %v4026_v42  ;;  %3669 = vmatprep.mubr.f32.mxu1 %v5723_v27  ;;  %v5733_v42 = vand.u32 4294901760, %v4170_v52 }
  0x5e   :  { %3767 = vmatpush3.msra.mxu1 %v3861_v6  ;;  %v5728_v6 = vand.u32 4294901760, %v4056_v55 }
  0x60   :  { %3619 = vmatmul.mubr.f32.gmra.mxu0 %v4029_v43  ;;  %3670 = vmatmul.mubr.f32.gmra.mxu1 %v5724_v5  ;;  %v5734_v43 = vand.u32 4294901760, %v4178_v57  ;;  %v5761_v5 = vld [vmem:[#allocation17_spill] sm:$0xff] }
  0x61   :  { %3621 = vmatprep.mubr.f32.mxu0 %v4043_v48  ;;  %3672 = vmatprep.mubr.f32.mxu1 %v5725_v28  ;;  %v5735_v48 = vand.u32 4294901760, %v4181_v3  ;;  %v5762_v28 = vld [vmem:[#allocation18_spill] sm:$0xff] }
  0x64   :  { %3622 = vmatmul.mubr.f32.gmra.mxu0 %v4056_v55  ;;  %3673 = vmatmul.mubr.f32.gmra.mxu1 %v5726_v29  ;;  %v5736_v55 = vand.u32 4294901760, %v4221_v35 }
  0x65   :  { %3624 = vmatprep.mubr.f32.mxu0 %v4092_v20  ;;  %3675 = vmatprep.mubr.f32.mxu1 %v5727_v30  ;;  %v5739_v20 = vand.u32 4294901760, %v4273_v15 }
  0x68   :  { %3625 = vmatmul.mubr.f32.gmra.mxu0 %v4121_v59  ;;  %3676 = vmatmul.mubr.f32.gmra.mxu1 %v5728_v6  ;;  %v5738_v59 = vand.u32 4294901760, %v4242_v46  ;;  %v5763_v6 = vld [vmem:[#allocation19_spill] sm:$0xff] }
  0x69   :  { %3627 = vmatprep.mubr.f32.mxu0 %v4147_v8  ;;  %3678 = vmatprep.mubr.f32.mxu1 %v5729_v40  ;;  %v5741_v8 = vand.u32 4294901760, %v4299_v60 }
  0x6c   :  { %3628 = vmatmul.mubr.f32.gmra.mxu0 %v4150_v38  ;;  %3679 = vmatmul.mubr.f32.gmra.mxu1 %v5730_v41  ;;  %v5764_v41 = vld [vmem:[#allocation20_spill] sm:$0xff] }
  0x6d   :  { %3630 = vmatprep.mubr.f32.mxu0 %v4170_v52  ;;  %3681 = vmatprep.mubr.f32.mxu1 %v5731_v11  ;;  %v5737_v52 = vand.u32 4294901760, %v4231_v56 }
  0x70   :  { %3631 = vmatmul.mubr.f32.gmra.mxu0 %v4178_v57  ;;  %3682 = vmatmul.mubr.f32.gmra.mxu1 %v5732_v33  ;;  %v5742_v57 = vand.u32 4294901760, %v4320_v31 }
  0x71   :  { %3633 = vmatprep.mubr.f32.mxu0 %v4181_v3  ;;  %3684 = vmatprep.mubr.f32.mxu1 %v5733_v42 }
  0x74   :  { %3634 = vmatmul.mubr.f32.gmra.mxu0 %v4221_v35  ;;  %3685 = vmatmul.mubr.f32.gmra.mxu1 %v5734_v43  ;;  %v5740_v35 = vand.u32 4294901760, %v4282_v14 }
  0x75   :  { %3636 = vmatprep.mubr.f32.mxu0 %v4231_v56  ;;  %3687 = vmatprep.mubr.f32.mxu1 %v5735_v48  ;;  %v5744_v56 = vand.u32 4294901760, %v4361_v54 }
  0x78   :  { %3637 = vmatmul.mubr.f32.gmra.mxu0 %v4242_v46  ;;  %3688 = vmatmul.mubr.f32.gmra.mxu1 %v5736_v55 }
  0x79   :  { %3639 = vmatprep.mubr.f32.mxu0 %v4273_v15  ;;  %3690 = vmatprep.mubr.f32.mxu1 %v5737_v52  ;;  %v5743_v15 = vand.u32 4294901760, %v4340_v49 }
  0x7c   :  { %3640 = vmatmul.mubr.f32.gmra.mxu0 %v4282_v14  ;;  %3691 = vmatmul.mubr.f32.gmra.mxu1 %v5738_v59  ;;  %v5747_v14 = vld [vmem:[#allocation3_spill] sm:$0xff] }
  0x7d   :  { %3642 = vmatprep.mubr.f32.mxu0 %v4299_v60  ;;  %3693 = vmatprep.mubr.f32.mxu1 %v5739_v20  ;;  %v5745_v60 = vand.u32 4294901760, %v4371_v7 }
  0x80   :  { %3643 = vmatmul.mubr.f32.gmra.mxu0 %v4320_v31  ;;  %3694 = vmatmul.mubr.f32.gmra.mxu1 %v5740_v35  ;;  %v4549_v38 = vpop.permute.xlu1 %239  ;;  %v5746_v31 = vld [vmem:[#allocation2_spill] sm:$0xff] }
  0x81   :  { %3645 = vmatprep.mubr.f32.mxu0 %v4340_v49  ;;  %3696 = vmatprep.mubr.f32.mxu1 %v5741_v8  ;;  %v5748_v49 = vld [vmem:[#allocation4_spill] sm:$0xff] }
  0x84   :  { %3646 = vmatmul.mubr.f32.gmra.mxu0 %v4361_v54  ;;  %3697 = vmatmul.mubr.f32.gmra.mxu1 %v5742_v57 }
  0x85   :  { %3648 = vmatprep.mubr.f32.mxu0 %v4371_v7  ;;  %3699 = vmatprep.mubr.f32.mxu1 %v5743_v15  ;;  %v5750_v7 = vld [vmem:[#allocation6_spill] sm:$0xff] }
  0x86   :  { %v4557_v3 = vpop.permute.xlu1 %159 }
  0x88   :  { %3649 = vmatmul.mubr.f32.gmra.mxu0 %v4385_v58  ;;  %3700 = vmatmul.mubr.f32.gmra.mxu1 %v5744_v56  ;;  %v5749_v58 = vld [vmem:[#allocation5_spill] sm:$0xff] }
  0x89   :  { %3651 = vmatprep.mubr.f32.mxu0 %v4398_v4  ;;  %3702 = vmatprep.mubr.f32.mxu1 %v5745_v60 }
  0x8c   :  { %3652 = vmatmul.mubr.f32.gmra.mxu0 %v4409_v32  ;;  %3703 = vmatmul.mubr.f32.gmra.mxu1 %v708_v23  ;;  %v4571_v46 = vpop.permute.xlu1 %154  ;;  %v5751_v32 = vld [vmem:[#allocation7_spill] sm:$0xff] }
  0x8d   :  { %3714 = vmatprep.mubr.f32.mxu0 %v5746_v31  ;;  %3705 = vmatprep.mubr.f32.mxu1 %v718_v21  ;;  %v5752_v21 = vld [vmem:[#allocation8_spill] sm:$0xff] }
  0x90   :  { %3715 = vmatmul.mubr.f32.vlgmr.msra.gmra.mxu0 %v5747_v14  ;;  %3706 = vmatmul.mubr.f32.gmra.mxu1 %v728_v0  ;;  %v4578_v54 = vpop.permute.xlu1 %149 }
  0x91   :  { %3717 = vmatprep.mubr.f32.mxu0 %v5748_v49  ;;  %3768 = vmatprep.mubr.f32.mxu1 %v5746_v31  ;;  %v4586_v23 = vpop.permute.xlu0 %244 }
  0x94   :  { %3718 = vmatmul.mubr.f32.gmra.mxu0 %v5749_v58  ;;  %3769 = vmatmul.mubr.f32.vlgmr.msra.gmra.mxu1 %v5747_v14 }
  0x95   :  { %3720 = vmatprep.mubr.f32.mxu0 %v5750_v7  ;;  %3771 = vmatprep.mubr.f32.mxu1 %v5748_v49  ;;  %v4584_v4 = vpop.permute.xlu1 %144  ;;  %v4600_v22 = vpop.permute.xlu0 %164 }
  0x98   :  { %3721 = vmatmul.mubr.f32.gmra.mxu0 %v5751_v32  ;;  %3772 = vmatmul.mubr.f32.gmra.mxu1 %v5749_v58 }
  0x99   :  { %3723 = vmatprep.mubr.f32.mxu0 %v5752_v21  ;;  %3774 = vmatprep.mubr.f32.mxu1 %v5750_v7  ;;  %v4592_v0 = vpop.permute.xlu1 %139  ;;  %v4608_v24 = vpop.permute.xlu0 %234 }
  0x9c   :  { %3724 = vmatmul.mubr.f32.gmra.mxu0 %v5753_v2  ;;  %3775 = vmatmul.mubr.f32.gmra.mxu1 %v5751_v32 }
  0x9d   :  { %3726 = vmatprep.mubr.f32.mxu0 %v5754_v19  ;;  %3777 = vmatprep.mubr.f32.mxu1 %v5752_v21  ;;  %v4598_v61 = vpop.permute.xlu1 %134 }
  0x9e   :  { %v4620_v27 = vpop.permute.xlu0 %229 }
  0xa0   :  { %3727 = vmatmul.mubr.f32.gmra.mxu0 %v5755_v17  ;;  %3778 = vmatmul.mubr.f32.gmra.mxu1 %v5753_v2 }
  0xa1   :  { %3729 = vmatprep.mubr.f32.mxu0 %v5756_v39  ;;  %3780 = vmatprep.mubr.f32.mxu1 %v5754_v19  ;;  %v4606_v53 = vpop.permute.xlu1 %129 }
  0xa2   :  { %v4628_v30 = vpop.permute.xlu0 %224 }
  0xa4   :  { %3730 = vmatmul.mubr.f32.gmra.mxu0 %v5757_v37  ;;  %3781 = vmatmul.mubr.f32.gmra.mxu1 %v5755_v17 }
  0xa5   :  { %3732 = vmatprep.mubr.f32.mxu0 %v5758_v62  ;;  %3783 = vmatprep.mubr.f32.mxu1 %v5756_v39  ;;  %v4616_v26 = vpop.permute.xlu1 %124 }
  0xa6   :  { %v4638_v11 = vpop.permute.xlu0 %219 }
  0xa8   :  { %3733 = vmatmul.mubr.f32.gmra.mxu0 %v5759_v25  ;;  %3784 = vmatmul.mubr.f32.gmra.mxu1 %v5757_v37 }
  0xa9   :  { %3735 = vmatprep.mubr.f32.mxu0 %v5760_v10  ;;  %3786 = vmatprep.mubr.f32.mxu1 %v5758_v62  ;;  %v4626_v29 = vpop.permute.xlu1 %119 }
  0xaa   :  { %v4644_v33 = vpop.permute.xlu0 %214 }
  0xac   :  { %3736 = vmatmul.mubr.f32.gmra.mxu0 %v5761_v5  ;;  %3787 = vmatmul.mubr.f32.gmra.mxu1 %v5759_v25 }
  0xad   :  { %3738 = vmatprep.mubr.f32.mxu0 %v5762_v28  ;;  %3789 = vmatprep.mubr.f32.mxu1 %v5760_v10  ;;  %v115_v40 = vpop.permute.xlu1 %114 }
  0xb0   :  { %3739 = vmatmul.mubr.f32.gmra.mxu0 %v4158_v45  ;;  %3790 = vmatmul.mubr.f32.gmra.mxu1 %v5761_v5 }
  0xb1   :  { %3741 = vmatprep.mubr.f32.mxu0 %v5763_v6  ;;  %3792 = vmatprep.mubr.f32.mxu1 %v5762_v28  ;;  %v110_v13 = vpop.permute.xlu1 %109 }
  0xb4   :  { %3742 = vmatmul.mubr.f32.gmra.mxu0 %v4183_v18  ;;  %3793 = vmatmul.mubr.f32.gmra.mxu1 %v4158_v45  ;;  %v4654_v45 = vpop.permute.xlu0 %209 }
  0xb5   :  { %3744 = vmatprep.mubr.f32.mxu0 %v5764_v41  ;;  %3795 = vmatprep.mubr.f32.mxu1 %v5763_v6 }
  0xb8   :  { %3745 = vmatmul.mubr.f32.gmra.mxu0 %v4233_v47  ;;  %3796 = vmatmul.mubr.f32.gmra.mxu1 %v4183_v18  ;;  %v105_v18 = vpop.permute.xlu1 %104 }
  0xb9   :  { %3747 = vmatprep.mubr.f32.mxu0 %v4244_v36  ;;  %3798 = vmatprep.mubr.f32.mxu1 %v5764_v41 }
  0xbc   :  { %3748 = vmatmul.mubr.f32.gmra.mxu0 %v4249_v1  ;;  %3799 = vmatmul.mubr.f32.gmra.mxu1 %v4233_v47  ;;  %v4660_v47 = vpop.permute.xlu0 %204 }
  0xbd   :  { %3750 = vmatprep.mubr.f32.mxu0 %v4261_v12  ;;  %3801 = vmatprep.mubr.f32.mxu1 %v4244_v36  ;;  %v100_v36 = vpop.permute.xlu1 %99 }
  0xc0   :  { %3751 = vmatmul.mubr.f32.gmra.mxu0 %v4287_v9  ;;  %3802 = vmatmul.mubr.f32.gmra.mxu1 %v4249_v1  ;;  %v4669_v1 = vpop.permute.xlu0 %199 }
  0xc1   :  { %3753 = vmatprep.mubr.f32.mxu0 %v4308_v50  ;;  %3804 = vmatprep.mubr.f32.mxu1 %v4261_v12  ;;  %v95_v12 = vpop.permute.xlu1 %94 }
  0xc4   :  { %3754 = vmatmul.mubr.f32.gmra.mxu0 %v4333_v44  ;;  %3805 = vmatmul.mubr.f32.gmra.mxu1 %v4287_v9 }
  0xc5   :  { %3756 = vmatprep.mubr.f32.mxu0 %v4342_v34  ;;  %3807 = vmatprep.mubr.f32.mxu1 %v4308_v50  ;;  %v90_v43 = vpop.permute.xlu1 %89 }
  0xc8   :  { %3757 = vmatmul.mubr.f32.gmra.mxu0 %v4363_v16  ;;  %3808 = vmatmul.mubr.f32.gmra.mxu1 %v4333_v44  ;;  %v4672_v44 = vpop.permute.xlu0 %194 }
  0xc9   :  { %3759 = vmatprep.mubr.f32.mxu0 %v4373_v63  ;;  %3810 = vmatprep.mubr.f32.mxu1 %v4342_v34 }
  0xcc   :  { %3760 = vmatmul.mubr.f32.gmra.mxu0 %v4387_v51  ;;  %3811 = vmatmul.mubr.f32.gmra.mxu1 %v4363_v16  ;;  %v4680_v56 = vpop.permute.xlu0 %189 }
  0xcd   :  { %3813 = vmatprep.mubr.f32.mxu1 %v4373_v63 }
  0xcf   :  { %v3500_v50 = vpop.f32.mrf.mxu0 }
  0xd0   :  { %3814 = vmatmul.mubr.f32.gmra.mxu1 %v4387_v51  ;;  %v433_v9 = vadd.f32 %v3500_v50, %v95_v12  ;;  %v185_v39 = vpop.permute.xlu0 %184 }
  0xd1   :  { %v422_v42 = vpop.f32.mrf.mxu0 }
  0xd2   :  { %v423_v34 = vadd.f32 %v422_v42, %v90_v43 }
  0xd3   :  { %v3554_v55 = vpop.f32.mrf.mxu1 }
  0xd4   :  { %v3503_v48 = vpop.f32.mrf.mxu0  ;;  %v4674_v59 = vadd.f32 %v3554_v55, %v433_v9  ;;  %v180_v12 = vpop.permute.xlu0 %179 }
  0xd5   :  { %v453_v52 = vadd.f32 %v3503_v48, %v105_v18  ;;  %v818_v20 = vpop.f32.mrf.mxu1 }
  0xd6   :  { %v442_v16 = vpop.f32.mrf.mxu0  ;;  %v4676_v35 = vadd.f32 %v818_v20, %v423_v34 }
  0xd7   :  { %v443_v57 = vadd.f32 %v442_v16, %v100_v36 }
  0xd8   :  { %v3506_v63 = vpop.f32.mrf.mxu0  ;;  %v3557_v8 = vpop.f32.mrf.mxu1 }
  0xd9   :  { %v473_v15 = vadd.f32 %v3506_v63, %v115_v40  ;;  %v4678_v51 = vadd.f32 %v3557_v8, %v453_v52 }
  0xda   :  { %v462_v60 = vpop.f32.mrf.mxu0  ;;  %v830_v31 = vpop.f32.mrf.mxu1 }
  0xdb   :  { %v4682_v14 = vadd.f32 %v830_v31, %v443_v57  ;;  %v463_v7 = vadd.f32 %v462_v60, %v110_v13 }
  0xdc   :  { %v3509_v49 = vpop.f32.mrf.mxu0  ;;  %v3560_v58 = vpop.f32.mrf.mxu1 }
  0xdd   :  { %v493_v32 = vadd.f32 %v3509_v49, %v4616_v26  ;;  %v4685_v21 = vadd.f32 %v3560_v58, %v473_v15 }
  0xde   :  { %v482_v2 = vpop.f32.mrf.mxu0  ;;  %v842_v19 = vpop.f32.mrf.mxu1 }
  0xdf   :  { %v4687_v17 = vadd.f32 %v842_v19, %v463_v7  ;;  %v483_v25 = vadd.f32 %v482_v2, %v4626_v29 }
  0xe0   :  { %v3512_v37 = vpop.f32.mrf.mxu0  ;;  %v3563_v62 = vpop.f32.mrf.mxu1 }
  0xe1   :  { %v513_v10 = vadd.f32 %v3512_v37, %v4598_v61  ;;  %v4691_v5 = vadd.f32 %v3563_v62, %v493_v32 }
  0xe2   :  { %v502_v28 = vpop.f32.mrf.mxu0  ;;  %v854_v6 = vpop.f32.mrf.mxu1 }
  0xe3   :  { %v4693_v40 = vadd.f32 %v854_v6, %v483_v25  ;;  %v503_v13 = vadd.f32 %v502_v28, %v4606_v53 }
  0xe4   :  { %v3515_v26 = vpop.f32.mrf.mxu0  ;;  %v3566_v41 = vpop.f32.mrf.mxu1 }
  0xe5   :  { %v533_v18 = vadd.f32 %v3515_v26, %v4584_v4  ;;  %v4697_v36 = vadd.f32 %v3566_v41, %v513_v10  ;;  %v175_v4 = vpop.permute.xlu0 %174 }
  0xe6   :  { %v522_v50 = vpop.f32.mrf.mxu0  ;;  %v866_v9 = vpop.f32.mrf.mxu1 }
  0xe7   :  { %v4699_v29 = vadd.f32 %v866_v9, %v503_v13  ;;  %v523_v43 = vadd.f32 %v522_v50, %v4592_v0 }
  0xe8   :  { %v3518_v61 = vpop.f32.mrf.mxu0  ;;  %v3569_v42 = vpop.f32.mrf.mxu1 }
  0xe9   :  { %v553_v48 = vadd.f32 %v3518_v61, %v4571_v46  ;;  %v4703_v55 = vadd.f32 %v3569_v42, %v533_v18  ;;  %v170_v32 = vpop.permute.xlu0 %169 }
  0xea   :  { %v542_v34 = vpop.f32.mrf.mxu0  ;;  %v878_v52 = vpop.f32.mrf.mxu1 }
  0xeb   :  { %v4705_v53 = vadd.f32 %v878_v52, %v523_v43  ;;  %v543_v63 = vadd.f32 %v542_v34, %v4578_v54 }
  0xec   :  { %v3521_v16 = vpop.f32.mrf.mxu0  ;;  %v3572_v20 = vpop.f32.mrf.mxu1 }
  0xed   :  { %v573_v8 = vadd.f32 %v3521_v16, %v4600_v22  ;;  %v4709_v57 = vadd.f32 %v3572_v20, %v553_v48 }
  0xee   :  { %v562_v15 = vpop.f32.mrf.mxu0  ;;  %v890_v60 = vpop.f32.mrf.mxu1 }
  0xef   :  { %v4711_v0 = vadd.f32 %v890_v60, %v543_v63  ;;  %v563_v49 = vadd.f32 %v562_v15, %v4557_v3 }
  0xf0   :  { %v3524_v46 = vpop.f32.mrf.mxu0  ;;  %v3575_v31 = vpop.f32.mrf.mxu1 }
  0xf1   :  { %v593_v58 = vadd.f32 %v3524_v46, %v175_v4  ;;  %v4714_v7 = vadd.f32 %v3575_v31, %v573_v8 }
  0xf2   :  { %v582_v2 = vpop.f32.mrf.mxu0  ;;  %v902_v19 = vpop.f32.mrf.mxu1 }
  0xf3   :  { %v4716_v37 = vadd.f32 %v902_v19, %v563_v49  ;;  %v583_v62 = vadd.f32 %v582_v2, %v170_v32 }
  0xf4   :  { %v3527_v54 = vpop.f32.mrf.mxu0  ;;  %v3578_v22 = vpop.f32.mrf.mxu1 }
  0xf5   :  { %v613_v25 = vadd.f32 %v3527_v54, %v185_v39  ;;  %v4718_v10 = vadd.f32 %v3578_v22, %v593_v58 }
  0xf6   :  { %v602_v28 = vpop.f32.mrf.mxu0  ;;  %v914_v6 = vpop.f32.mrf.mxu1 }
  0xf7   :  { %v4720_v26 = vadd.f32 %v914_v6, %v583_v62  ;;  %v603_v13 = vadd.f32 %v602_v28, %v180_v12 }
  0xf8   :  { %v3530_v41 = vpop.f32.mrf.mxu0  ;;  %v3581_v3 = vpop.f32.mrf.mxu1 }
  0xf9   :  { %v633_v18 = vadd.f32 %v3530_v41, %v4672_v44  ;;  %v4723_v50 = vadd.f32 %v3581_v3, %v613_v25 }
  0xfa   :  { %v622_v9 = vpop.f32.mrf.mxu0  ;;  %v926_v61 = vpop.f32.mrf.mxu1 }
  0xfb   :  { %v4725_v42 = vadd.f32 %v926_v61, %v603_v13  ;;  %v623_v39 = vadd.f32 %v622_v9, %v4680_v56 }
  0xfc   :  { %v3533_v43 = vpop.f32.mrf.mxu0  ;;  %v3584_v48 = vpop.f32.mrf.mxu1 }
  0xfd   :  { %v653_v34 = vadd.f32 %v3533_v43, %v4660_v47  ;;  %v4729_v52 = vadd.f32 %v3584_v48, %v633_v18 }
  0xfe   :  { %v642_v4 = vpop.f32.mrf.mxu0  ;;  %v938_v16 = vpop.f32.mrf.mxu1 }
  0xff   :  { %v4731_v20 = vadd.f32 %v938_v16, %v623_v39  ;;  %v643_v63 = vadd.f32 %v642_v4, %v4669_v1 }
 0x100   :  { %v3536_v12 = vpop.f32.mrf.mxu0  ;;  %v3587_v44 = vpop.f32.mrf.mxu1 }
 0x101   :  { %v673_v8 = vadd.f32 %v3536_v12, %v4644_v33  ;;  %v4735_v15 = vadd.f32 %v3587_v44, %v653_v34 }
 0x102   :  { %v662_v60 = vpop.f32.mrf.mxu0  ;;  %v950_v46 = vpop.f32.mrf.mxu1 }
 0x103   :  { %v4737_v31 = vadd.f32 %v950_v46, %v643_v63  ;;  %v663_v49 = vadd.f32 %v662_v60, %v4654_v45 }
 0x104   :  { %v3539_v56 = vpop.f32.mrf.mxu0  ;;  %v3590_v47 = vpop.f32.mrf.mxu1 }
 0x105   :  { %v693_v58 = vadd.f32 %v3539_v56, %v4628_v30  ;;  %v4741_v32 = vadd.f32 %v3590_v47, %v673_v8 }
 0x106   :  { %v682_v2 = vpop.f32.mrf.mxu0  ;;  %v962_v19 = vpop.f32.mrf.mxu1 }
 0x107   :  { %v4743_v54 = vadd.f32 %v962_v19, %v663_v49  ;;  %v683_v22 = vadd.f32 %v682_v2, %v4638_v11 }
 0x108   :  { %v3542_v1 = vpop.f32.mrf.mxu0  ;;  %v3593_v33 = vpop.f32.mrf.mxu1 }
 0x109   :  { %v713_v62 = vadd.f32 %v3542_v1, %v4608_v24  ;;  %v4747_v25 = vadd.f32 %v3593_v33, %v693_v58 }
 0x10a   :  { %v702_v28 = vpop.f32.mrf.mxu0  ;;  %v974_v6 = vpop.f32.mrf.mxu1 }
 0x10b   :  { %v4749_v41 = vadd.f32 %v974_v6, %v683_v22  ;;  %v703_v3 = vadd.f32 %v702_v28, %v4620_v27 }
 0x10c   :  { %v3545_v45 = vpop.f32.mrf.mxu0  ;;  %v3596_v30 = vpop.f32.mrf.mxu1 }
 0x10d   :  { %v733_v13 = vadd.f32 %v3545_v45, %v4586_v23  ;;  %v4753_v18 = vadd.f32 %v3596_v30, %v713_v62 }
 0x10e   :  { %v722_v9 = vpop.f32.mrf.mxu0  ;;  %v986_v61 = vpop.f32.mrf.mxu1 }
 0x10f   :  { %v4755_v43 = vadd.f32 %v986_v61, %v703_v3  ;;  %v723_v48 = vadd.f32 %v722_v9, %v4549_v38 }
 0x110   :  { %v3608_v11 = vpop.f32.mrf.mxu0  ;;  %v3599_v24 = vpop.f32.mrf.mxu1 }
 0x111   :  { %v1090_v39 = vadd.f32 %v3608_v11, %v4674_v59  ;;  %v4759_v34 = vadd.f32 %v3599_v24, %v733_v13 }
 0x112   :  { %v1082_v4 = vpop.f32.mrf.mxu0  ;;  %v998_v16 = vpop.f32.mrf.mxu1 }
 0x113   :  { %v1083_v27 = vadd.f32 %v1082_v4, %v4676_v35  ;;  %v4762_v12 = vadd.f32 %v998_v16, %v723_v48 }
 0x114   :  { %v3611_v23 = vpop.f32.mrf.mxu0  ;;  %v3662_v44 = vpop.f32.mrf.mxu1 }
 0x115   :  { %v1104_v63 = vadd.f32 %v3611_v23, %v4678_v51  ;;  %v4765_v8 = vadd.f32 %v3662_v44, %v1090_v39 }
 0x116   :  { %v1096_v60 = vpop.f32.mrf.mxu0  ;;  %v1375_v46 = vpop.f32.mrf.mxu1 }
 0x117   :  { %v1097_v38 = vadd.f32 %v1096_v60, %v4682_v14  ;;  %v4768_v56 = vadd.f32 %v1375_v46, %v1083_v27 }
 0x118   :  { %v3614_v59 = vpop.f32.mrf.mxu0  ;;  %v3665_v47 = vpop.f32.mrf.mxu1 }
 0x119   :  { %v1118_v49 = vadd.f32 %v3614_v59, %v4685_v21  ;;  %v4771_v58 = vadd.f32 %v3665_v47, %v1104_v63 }
 0x11a   :  { %v1110_v35 = vpop.f32.mrf.mxu0  ;;  %v1391_v2 = vpop.f32.mrf.mxu1 }
 0x11b   :  { %v1111_v19 = vadd.f32 %v1110_v35, %v4687_v17  ;;  %v4774_v1 = vadd.f32 %v1391_v2, %v1097_v38 }
 0x11c   :  { %v3617_v51 = vpop.f32.mrf.mxu0  ;;  %v3668_v33 = vpop.f32.mrf.mxu1 }
 0x11d   :  { %v1132_v22 = vadd.f32 %v3617_v51, %v4691_v5  ;;  %v4777_v62 = vadd.f32 %v3668_v33, %v1118_v49 }
 0x11e   :  { %v1124_v14 = vpop.f32.mrf.mxu0  ;;  %v1407_v28 = vpop.f32.mrf.mxu1 }
 0x11f   :  { %v1125_v6 = vadd.f32 %v1124_v14, %v4693_v40  ;;  %v4780_v45 = vadd.f32 %v1407_v28, %v1111_v19 }
 0x120   :  { %v3620_v21 = vpop.f32.mrf.mxu0  ;;  %v3671_v30 = vpop.f32.mrf.mxu1 }
 0x121   :  { %v1146_v3 = vadd.f32 %v3620_v21, %v4697_v36  ;;  %v4783_v13 = vadd.f32 %v3671_v30, %v1132_v22 }
 0x122   :  { %v1138_v17 = vpop.f32.mrf.mxu0  ;;  %v1423_v9 = vpop.f32.mrf.mxu1 }
 0x123   :  { %v1139_v61 = vadd.f32 %v1138_v17, %v4699_v29  ;;  %v4786_v11 = vadd.f32 %v1423_v9, %v1125_v6 }
 0x124   :  { %v3623_v5 = vpop.f32.mrf.mxu0  ;;  %v3674_v24 = vpop.f32.mrf.mxu1 }
 0x125   :  { %v1160_v48 = vadd.f32 %v3623_v5, %v4703_v55  ;;  %v4789_v39 = vadd.f32 %v3674_v24, %v1146_v3  ;;  %v4800_v55 = vld.sshfl [vmem:[%s5563_s3] sm:$0x33 pattern:$0x76325410] }
 0x126   :  { %v1152_v40 = vpop.f32.mrf.mxu0  ;;  %v1439_v4 = vpop.f32.mrf.mxu1 }
 0x127   :  { %v1153_v16 = vadd.f32 %v1152_v40, %v4705_v53  ;;  %v4792_v27 = vadd.f32 %v1439_v4, %v1139_v61  ;;  %v2200_v53 = vcombine.high %v4800_v55, %v4800_v55 }
 0x128   :  { %v3626_v36 = vpop.f32.mrf.mxu0  ;;  %v3677_v23 = vpop.f32.mrf.mxu1 }
 0x129   :  { %v1174_v44 = vadd.f32 %v3626_v36, %v4709_v57  ;;  %v4795_v63 = vadd.f32 %v3677_v23, %v1160_v48  ;;  %v4810_v35 = vand.u32 4294901760, %v2200_v53 }
 0x12a   :  { %v1166_v29 = vpop.f32.mrf.mxu0  ;;  %v1455_v60 = vpop.f32.mrf.mxu1 }
 0x12b   :  { %v1167_v46 = vadd.f32 %v1166_v29, %v4711_v0  ;;  %v4803_v38 = vadd.f32 %v1455_v60, %v1153_v16  ;;  %5765 = vst [vmem:[#allocation2_spill] sm:$0xff] %v4810_v35  ;;  %v4816_v0 = vsub.f32 %v2200_v53, %v4810_v35  ;;  %2540 = vmatprep.mubr.f32.mxu1 %v4810_v35 }
 0x12c   :  { %v3629_v59 = vpop.f32.mrf.mxu0  ;;  %v3680_v47 = vpop.f32.mrf.mxu1 }
 0x12d   :  { %v1188_v57 = vadd.f32 %v3629_v59, %v4714_v7  ;;  %v4808_v49 = vadd.f32 %v3680_v47, %v1174_v44  ;;  %5766 = vst [vmem:[#allocation3_spill] sm:$0xff] %v4816_v0  ;;  %v5620_v6 = vand.u32 4294901760, %v4816_v0 }
 0x12e   :  { %v1180_v2 = vpop.f32.mrf.mxu0  ;;  %v1471_v19 = vpop.f32.mrf.mxu1 }
 0x12f   :  { %v1181_v51 = vadd.f32 %v1180_v2, %v4716_v37  ;;  %v4813_v33 = vadd.f32 %v1471_v19, %v1167_v46  ;;  %v2302_v17 = vsub.f32 %v4816_v0, %v5620_v6 }
 0x130   :  { %v3632_v22 = vpop.f32.mrf.mxu0  ;;  %v3683_v14 = vpop.f32.mrf.mxu1 }
 0x131   :  { %v1202_v28 = vadd.f32 %v3632_v22, %v4718_v10  ;;  %v4820_v7 = vadd.f32 %v3683_v14, %v1188_v57  ;;  %v2303_v10 = vand.u32 4294901760, %v2302_v17 }
 0x132   :  { %v1194_v21 = vpop.f32.mrf.mxu0  ;;  %v1487_v30 = vpop.f32.mrf.mxu1 }
 0x133   :  { %v1195_v3 = vadd.f32 %v1194_v21, %v4720_v26  ;;  %v4824_v37 = vadd.f32 %v1487_v30, %v1181_v51  ;;  %2304 = vmatprep.mubr.f32.mxu0 %v2303_v10 }
 0x134   :  { %v3635_v9 = vpop.f32.mrf.mxu0  ;;  %v3686_v61 = vpop.f32.mrf.mxu1 }
 0x135   :  { %v1216_v5 = vadd.f32 %v3635_v9, %v4723_v50  ;;  %v4830_v24 = vadd.f32 %v3686_v61, %v1202_v28 }
 0x136   :  { %v1208_v48 = vpop.f32.mrf.mxu0  ;;  %v1503_v40 = vpop.f32.mrf.mxu1 }
 0x137   :  { %v1209_v4 = vadd.f32 %v1208_v48, %v4725_v42  ;;  %v4833_v16 = vadd.f32 %v1503_v40, %v1195_v3 }
 0x138   :  { %v3638_v26 = vpop.f32.mrf.mxu0  ;;  %v3689_v36 = vpop.f32.mrf.mxu1 }
 0x139   :  { %v1230_v23 = vadd.f32 %v3638_v26, %v4729_v52  ;;  %v4836_v44 = vadd.f32 %v3689_v36, %v1216_v5 }
 0x13a   :  { %v1222_v29 = vpop.f32.mrf.mxu0  ;;  %v1519_v60 = vpop.f32.mrf.mxu1 }
 0x13b   :  { %v1223_v50 = vadd.f32 %v1222_v29, %v4731_v20  ;;  %v4839_v46 = vadd.f32 %v1519_v60, %v1209_v4 }
 0x13c   :  { %v3641_v53 = vpop.f32.mrf.mxu0  ;;  %v3692_v59 = vpop.f32.mrf.mxu1 }
 0x13d   :  { %v1244_v47 = vadd.f32 %v3641_v53, %v4735_v15  ;;  %v4842_v42 = vadd.f32 %v3692_v59, %v1230_v23 }
 0x13e   :  { %v1236_v57 = vpop.f32.mrf.mxu0  ;;  %v1535_v2 = vpop.f32.mrf.mxu1 }
 0x13f   :  { %5767 = vst [vmem:[#allocation4_spill] sm:$0xff] %v4842_v42  ;;  %v1237_v19 = vadd.f32 %v1236_v57, %v4737_v31  ;;  %v4845_v51 = vadd.f32 %v1535_v2, %v1223_v50 }
 0x140   :  { %v3644_v52 = vpop.f32.mrf.mxu0  ;;  %v3695_v22 = vpop.f32.mrf.mxu1 }
 0x141   :  { %5768 = vst [vmem:[#allocation5_spill] sm:$0xff] %v4845_v51  ;;  %v1258_v14 = vadd.f32 %v3644_v52, %v4741_v32  ;;  %v4848_v28 = vadd.f32 %v3695_v22, %v1244_v47 }
 0x142   :  { %v1250_v20 = vpop.f32.mrf.mxu0  ;;  %v1551_v21 = vpop.f32.mrf.mxu1 }
 0x143   :  { %5769 = vst [vmem:[#allocation6_spill] sm:$0xff] %v4848_v28  ;;  %v1251_v30 = vadd.f32 %v1250_v20, %v4743_v54  ;;  %v4851_v3 = vadd.f32 %v1551_v21, %v1237_v19 }
 0x144   :  { %v3647_v15 = vpop.f32.mrf.mxu0  ;;  %v3698_v17 = vpop.f32.mrf.mxu1 }
 0x145   :  { %5770 = vst [vmem:[#allocation7_spill] sm:$0xff] %v4851_v3  ;;  %v1272_v9 = vadd.f32 %v3647_v15, %v4747_v25  ;;  %v4854_v61 = vadd.f32 %v3698_v17, %v1258_v14 }
 0x146   :  { %v1264_v31 = vpop.f32.mrf.mxu0  ;;  %v1567_v5 = vpop.f32.mrf.mxu1 }
 0x147   :  { %v1265_v10 = vadd.f32 %v1264_v31, %v4749_v41  ;;  %v4857_v48 = vadd.f32 %v1567_v5, %v1251_v30 }
 0x148   :  { %v3650_v32 = vpop.f32.mrf.mxu0  ;;  %v3701_v40 = vpop.f32.mrf.mxu1 }
 0x149   :  { %5771 = vst [vmem:[#allocation8_spill] sm:$0xff] %v4857_v48  ;;  %v1286_v4 = vadd.f32 %v3650_v32, %v4753_v18  ;;  %v4860_v26 = vadd.f32 %v3701_v40, %v1272_v9 }
 0x14a   :  { %v1278_v54 = vpop.f32.mrf.mxu0  ;;  %v1583_v36 = vpop.f32.mrf.mxu1 }
 0x14b   :  { %v1279_v23 = vadd.f32 %v1278_v54, %v4755_v43  ;;  %v4863_v29 = vadd.f32 %v1583_v36, %v1265_v10 }
 0x14c   :  { %v4865_v25 = vpop.f32.mrf.mxu0  ;;  %v3704_v60 = vpop.f32.mrf.mxu1 }
 0x14d   :  { %v4867_v50 = vadd.f32 %v3704_v60, %v1286_v4 }
 0x14e   :  { %v4869_v41 = vpop.f32.mrf.mxu0  ;;  %v1599_v53 = vpop.f32.mrf.mxu1 }
 0x14f   :  { %v4871_v59 = vadd.f32 %v1599_v53, %v1279_v23 }
 0x150   :  { %v3716_v47 = vpop.f32.mrf.mxu0  ;;  %v4873_v18 = vpop.f32.mrf.mxu1 }
 0x151   :  { %5772 = vst [vmem:[#allocation9_spill] sm:$0xff] %v4871_v59  ;;  %v1710_v57 = vadd.f32 %v3716_v47, %v4765_v8 }
 0x152   :  { %v1703_v2 = vpop.f32.mrf.mxu0  ;;  %v4876_v19 = vpop.f32.mrf.mxu1 }
 0x153   :  { %v1704_v43 = vadd.f32 %v1703_v2, %v4768_v56 }
 0x154   :  { %v3719_v52 = vpop.f32.mrf.mxu0  ;;  %v3770_v22 = vpop.f32.mrf.mxu1 }
 0x155   :  { %v1722_v14 = vadd.f32 %v3719_v52, %v4771_v58  ;;  %v4880_v20 = vadd.f32 %v3770_v22, %v1710_v57 }
 0x156   :  { %v1715_v21 = vpop.f32.mrf.mxu0  ;;  %v1963_v30 = vpop.f32.mrf.mxu1 }
 0x157   :  { %5773 = vst [vmem:[#allocation10_spill] sm:$0xff] %v4880_v20  ;;  %v1716_v15 = vadd.f32 %v1715_v21, %v4774_v1  ;;  %v4883_v17 = vadd.f32 %v1963_v30, %v1704_v43 }
 0x158   :  { %v3722_v9 = vpop.f32.mrf.mxu0  ;;  %v3773_v31 = vpop.f32.mrf.mxu1 }
 0x159   :  { %5774 = vst [vmem:[#allocation11_spill] sm:$0xff] %v4883_v17  ;;  %v1734_v8 = vadd.f32 %v3722_v9, %v4777_v62  ;;  %v4886_v5 = vadd.f32 %v3773_v31, %v1722_v14 }
 0x15a   :  { %v1727_v10 = vpop.f32.mrf.mxu0  ;;  %v1975_v56 = vpop.f32.mrf.mxu1 }
 0x15b   :  { %v1728_v32 = vadd.f32 %v1727_v10, %v4780_v45  ;;  %v4889_v40 = vadd.f32 %v1975_v56, %v1716_v15 }
 0x15c   :  { %v3725_v58 = vpop.f32.mrf.mxu0  ;;  %v3776_v4 = vpop.f32.mrf.mxu1 }
 0x15d   :  { %v1746_v54 = vadd.f32 %v3725_v58, %v4783_v13  ;;  %v4892_v36 = vadd.f32 %v3776_v4, %v1734_v8  ;;  %v4906_v58 = vand.u32 4294901760, %v4800_v55 }
 0x15e   :  { %v1739_v1 = vpop.f32.mrf.mxu0  ;;  %v1987_v23 = vpop.f32.mrf.mxu1 }
 0x15f   :  { %v1740_v60 = vadd.f32 %v1739_v1, %v4786_v11  ;;  %v4895_v53 = vadd.f32 %v1987_v23, %v1728_v32  ;;  %5775 = vst [vmem:[#allocation12_spill] sm:$0xff] %v4906_v58 }
 0x160   :  { %v3728_v62 = vpop.f32.mrf.mxu0  ;;  %v3779_v47 = vpop.f32.mrf.mxu1 }
 0x161   :  { %v4897_v57 = vadd.f32 %v3779_v47, %v1746_v54  ;;  %v4919_v47 = vsub.f32 %v4800_v55, %v4906_v58  ;;  %v1758_v35 = vadd.f32 %v3728_v62, %v4789_v39 }
 0x162   :  { %v1751_v2 = vpop.f32.mrf.mxu0  ;;  %v1999_v45 = vpop.f32.mrf.mxu1 }
 0x163   :  { %v4899_v43 = vadd.f32 %v1999_v45, %v1740_v60  ;;  %5776 = vst [vmem:[#allocation13_spill] sm:$0xff] %v4919_v47  ;;  %v1752_v3 = vadd.f32 %v1751_v2, %v4792_v27  ;;  %v5627_v55 = vand.u32 4294901760, %v4919_v47 }
 0x164   :  { %v3731_v52 = vpop.f32.mrf.mxu0  ;;  %v3782_v22 = vpop.f32.mrf.mxu1 }
 0x165   :  { %v1770_v60 = vadd.f32 %v3731_v52, %v4795_v63  ;;  %v2018_v63 = vadd.f32 %v3782_v22, %v1758_v35  ;;  %v1300_v35 = vadd.f32 %v4865_v25, %v4759_v34  ;;  %v2156_v25 = vmax.f32 %v4886_v5, 0.0 }
 0x166   :  { %v1763_v14 = vpop.f32.mrf.mxu0  ;;  %v2011_v13 = vpop.f32.mrf.mxu1 }
 0x167   :  { %v1764_v58 = vadd.f32 %v1763_v14, %v4803_v38  ;;  %v2012_v48 = vadd.f32 %v2011_v13, %v1752_v3  ;;  %v4949_v3 = vsub.f32 %v4919_v47, %v5627_v55  ;;  %v4959_v34 = vadd.f32 %v4873_v18, %v1300_v35 }
 0x168   :  { %v3734_v21 = vpop.f32.mrf.mxu0  ;;  %v3785_v30 = vpop.f32.mrf.mxu1  ;;  %v2159_v18 = vmax.f32 %v4899_v43, 0.0  ;;  %v5789_v47 = vmax.f32 %v4880_v20, 0.0 }
 0x169   :  { %v1782_v0 = vadd.f32 %v3734_v21, %v4808_v49  ;;  %v2030_v51 = vadd.f32 %v3785_v30, %v1770_v60  ;;  %v2160_v49 = vmax.f32 %v4897_v57, 0.0  ;;  %5778 = vst [vmem:[#allocation15_spill] sm:$0xff] %v4949_v3  ;;  %v2161_v57 = vmax.f32 %v2012_v48, 0.0 }
 0x16a   :  { %v1775_v15 = vpop.f32.mrf.mxu0  ;;  %v2023_v9 = vpop.f32.mrf.mxu1  ;;  %v2158_v30 = vmax.f32 %v4892_v36, 0.0  ;;  %v5791_v3 = vmax.f32 %v4883_v17, 0.0 }
 0x16b   :  { %v2164_v39 = vmax.f32 %v2030_v51, 0.0  ;;  %v1776_v27 = vadd.f32 %v1775_v15, %v4813_v33  ;;  %v2024_v62 = vadd.f32 %v2023_v9, %v1764_v58  ;;  %v1293_v51 = vadd.f32 %v4869_v41, %v4762_v12 }
 0x16c   :  { %v3737_v31 = vpop.f32.mrf.mxu0  ;;  %v3788_v11 = vpop.f32.mrf.mxu1  ;;  %v2157_v9 = vmax.f32 %v4895_v53, 0.0  ;;  %v4966_v12 = vand.u32 4294901760, %v2160_v49  ;;  %v4982_v58 = vand.u32 4294901760, %v2161_v57  ;;  %v4991_v43 = vand.u32 4294901760, %v2158_v30 }
 0x16d   :  { %v2042_v52 = vadd.f32 %v3788_v11, %v1782_v0  ;;  %v2162_v0 = vmax.f32 %v2018_v63, 0.0  ;;  %v1794_v33 = vadd.f32 %v3737_v31, %v4820_v7  ;;  %v4963_v15 = vand.u32 4294901760, %v2164_v39 }
 0x16e   :  { %v4901_v8 = vpop.f32.mrf.mxu0  ;;  %v2035_v10 = vpop.f32.mrf.mxu1  ;;  %5780 = vst [vmem:[#allocation17_spill] sm:$0xff] %v4966_v12  ;;  %v2163_v48 = vmax.f32 %v2024_v62, 0.0  ;;  %v4973_v11 = vadd.f32 %v4876_v19, %v1293_v51  ;;  %5782 = vst [vmem:[#allocation19_spill] sm:$0xff] %v4982_v58  ;;  %v4996_v62 = vand.u32 4294901760, %v2157_v9  ;;  %v4999_v35 = vsub.f32 %v2160_v49, %v4966_v12 }
 0x16f   :  { %v2166_v38 = vmax.f32 %v2042_v52, 0.0  ;;  %v2036_v22 = vadd.f32 %v2035_v10, %v1776_v27  ;;  %5779 = vst [vmem:[#allocation16_spill] sm:$0xff] %v4963_v15  ;;  %v4976_v5 = vand.u32 4294901760, %v2162_v0  ;;  %v4988_v52 = vand.u32 4294901760, %v2156_v25  ;;  %5784 = vst [vmem:[#allocation21_spill] sm:$0xff] %v4991_v43 }
 0x170   :  { %v4903_v56 = vpop.f32.mrf.mxu0  ;;  %v3791_v32 = vpop.f32.mrf.mxu1  ;;  %v4994_v27 = vsub.f32 %v2164_v39, %v4963_v15  ;;  %5786 = vst [vmem:[#allocation23_spill] sm:$0xff] %v4996_v62  ;;  %v5001_v51 = vand.u32 4294901760, %v2163_v48  ;;  %v5003_v53 = vand.u32 4294901760, %v2159_v18  ;;  %v1788_v39 = vadd.f32 %v4901_v8, %v4824_v37 }
 0x171   :  { %v2054_v7 = vadd.f32 %v3791_v32, %v1794_v33  ;;  %5781 = vst [vmem:[#allocation18_spill] sm:$0xff] %v4976_v5  ;;  %v4978_v36 = vand.u32 4294901760, %v2166_v38  ;;  %v2165_v32 = vmax.f32 %v2036_v22, 0.0  ;;  %5783 = vst [vmem:[#allocation20_spill] sm:$0xff] %v4988_v52  ;;  %v5006_v10 = vsub.f32 %v2162_v0, %v4976_v5 }
 0x172   :  { %v4908_v4 = vpop.f32.mrf.mxu0  ;;  %v4910_v54 = vpop.f32.mrf.mxu1  ;;  %5785 = vst [vmem:[#allocation22_spill] sm:$0xff] %v4994_v27  ;;  %5787 = vst [vmem:[#allocation24_spill] sm:$0xff] %v5001_v51  ;;  %v5015_v49 = vand.u32 4294901760, %v5789_v47  ;;  %v5022_v12 = vsub.f32 %v2161_v57, %v4982_v58  ;;  %v5794_v37 = vmax.f32 %v4889_v40, 0.0  ;;  %v5039_v57 = vsub.f32 %v2157_v9, %v4996_v62 }
 0x173   :  { %v2168_v33 = vmax.f32 %v2054_v7, 0.0  ;;  %5788 = vst [vmem:[#allocation25_spill] sm:$0xff] %v5003_v53  ;;  %v5009_v19 = vsub.f32 %v2166_v38, %v4978_v36  ;;  %v5019_v7 = vand.u32 4294901760, %v5791_v3  ;;  %v5024_v15 = vand.u32 4294901760, %v2165_v32 }
 0x174   :  { %v4912_v1 = vpop.f32.mrf.mxu0  ;;  %v4914_v23 = vpop.f32.mrf.mxu1  ;;  %5790 = vst [vmem:[#allocation26_spill] sm:$0xff] %v5015_v49  ;;  %v5027_v38 = vsub.f32 %v2156_v25, %v4988_v52  ;;  %v5031_v8 = vand.u32 4294901760, %v5794_v37  ;;  %v2048_v17 = vadd.f32 %v4910_v54, %v1788_v39  ;;  %v5036_v3 = vsub.f32 %v2158_v30, %v4991_v43 }
 0x175   :  { %5792 = vst [vmem:[#allocation27_spill] sm:$0xff] %v5019_v7  ;;  %v5042_v7 = vsub.f32 %v2163_v48, %v5001_v51  ;;  %v5044_v20 = vand.u32 4294901760, %v2168_v33  ;;  %v5054_v9 = vsub.f32 %v2165_v32, %v5024_v15  ;;  %v1806_v48 = vadd.f32 %v4903_v56, %v4830_v24 }
 0x176   :  { %v4921_v45 = vpop.f32.mrf.mxu0  ;;  %v4923_v6 = vpop.f32.mrf.mxu1  ;;  %5793 = vst [vmem:[#allocation28_spill] sm:$0xff] %v5027_v38  ;;  %5795 = vst [vmem:[#allocation29_spill] sm:$0xff] %v5031_v8  ;;  %v5048_v38 = vsub.f32 %v2159_v18, %v5003_v53  ;;  %v5060_v47 = vadd.f32 %v4908_v4, %v4833_v16  ;;  %v5797_v18 = vand.u32 4294901760, %v4994_v27  ;;  %v2167_v30 = vmax.f32 %v2048_v17, 0.0 }
 0x177   :  { %5777 = vst [vmem:[#allocation14_spill] sm:$0xff] %v4923_v6  ;;  %5796 = vst [vmem:[#allocation30_spill] sm:$0xff] %v5036_v3  ;;  %v5071_v24 = vsub.f32 %v2168_v33, %v5044_v20  ;;  %v1818_v16 = vadd.f32 %v4912_v1, %v4836_v44  ;;  %v5076_v56 = vadd.f32 %v4914_v23, %v1806_v48  ;;  %v5799_v1 = vld [vmem:[#allocation9_spill] sm:$0xff] }
 0x178   :  { %v4928_v28 = vpop.f32.mrf.mxu0  ;;  %v4930_v42 = vpop.f32.mrf.mxu1  ;;  %v5065_v54 = vsub.f32 %v4994_v27, %v5797_v18  ;;  %v5798_v18 = vand.u32 4294901760, %v5009_v19  ;;  %v5092_v27 = vand.u32 4294901760, %v2167_v30 }
 0x17a   :  { %v4934_v59 = vpop.f32.mrf.mxu0  ;;  %v4936_v6 = vpop.f32.mrf.mxu1  ;;  %v5081_v17 = vsub.f32 %v5009_v19, %v5798_v18 }
 0x17c   :  { %v4940_v2 = vpop.f32.mrf.mxu0  ;;  %v4942_v21 = vpop.f32.mrf.mxu1 }
 0x17e   :  { %v4954_v14 = vpop.f32.mrf.mxu0  ;;  %v4956_v13 = vpop.f32.mrf.mxu1 }
 0x180   :  { %v4968_v41 = vpop.f32.mrf.mxu0  ;;  %v4970_v31 = vpop.f32.mrf.mxu1 }
 0x181   :  { %v1854_v44 = vadd.f32 %v4968_v41, %v4854_v61 }
 0x182   :  { %v4984_v60 = vpop.f32.mrf.mxu0  ;;  %v4986_v63 = vpop.f32.mrf.mxu1 }
 0x184   :  { %v3755_v22 = vpop.f32.mrf.mxu0  ;;  %v3806_v55 = vpop.f32.mrf.mxu1 }
 0x185   :  { %v1866_v39 = vadd.f32 %v3755_v22, %v4860_v26 }
 0x186   :  { %v1859_v0 = vpop.f32.mrf.mxu0  ;;  %v2107_v5 = vpop.f32.mrf.mxu1 }
 0x187   :  { %v1860_v26 = vadd.f32 %v1859_v0, %v4863_v29  ;;  %v5800_v0 = vld [vmem:[#allocation8_spill] sm:$0xff] }
 0x188   :  { %v3758_v25 = vpop.f32.mrf.mxu0  ;;  %v3809_v52 = vpop.f32.mrf.mxu1 }
 0x189   :  { %v1878_v32 = vadd.f32 %v3758_v25, %v4867_v50  ;;  %v2126_v50 = vadd.f32 %v3809_v52, %v1866_v39  ;;  %v5087_v25 = vadd.f32 %v4921_v45, %v4839_v46  ;;  %v1848_v39 = vadd.f32 %v4984_v60, %v5800_v0 }
 0x18a   :  { %v1871_v37 = vpop.f32.mrf.mxu0  ;;  %v2119_v62 = vpop.f32.mrf.mxu1  ;;  %v2114_v46 = vadd.f32 %v3806_v55, %v1854_v44  ;;  %v5106_v60 = vsub.f32 %v2167_v30, %v5092_v27  ;;  %v5803_v44 = vld [vmem:[#allocation7_spill] sm:$0xff] }
 0x18b   :  { %v1872_v23 = vadd.f32 %v1871_v37, %v5799_v1  ;;  %v2120_v18 = vadd.f32 %v2119_v62, %v1860_v26  ;;  %v2180_v33 = vmax.f32 %v2126_v50, 0.0  ;;  %v5801_v1 = vld [vmem:[#allocation4_spill] sm:$0xff]  ;;  %v5802_v26 = vld [vmem:[#allocation6_spill] sm:$0xff] }
 0x18c   :  { %v3761_v4 = vpop.f32.mrf.mxu0  ;;  %v3812_v43 = vpop.f32.mrf.mxu1  ;;  %v1830_v62 = vadd.f32 %v4928_v28, %v5801_v1 }
 0x18d   :  { %v2138_v22 = vadd.f32 %v3812_v43, %v1878_v32  ;;  %v1890_v29 = vadd.f32 %v3761_v4, %v4959_v34  ;;  %v1842_v34 = vadd.f32 %v4940_v2, %v5802_v26  ;;  %v2108_v4 = vadd.f32 %v2107_v5, %v1848_v39 }
 0x18e   :  { %v1883_v48 = vpop.f32.mrf.mxu0  ;;  %v2131_v49 = vpop.f32.mrf.mxu1  ;;  %v2179_v55 = vmax.f32 %v2120_v18, 0.0  ;;  %v5123_v18 = vadd.f32 %v4930_v42, %v1818_v16  ;;  %v5650_v42 = vand.u32 4294901760, %v5106_v60 }
 0x18f   :  { %v2182_v52 = vmax.f32 %v2138_v22, 0.0  ;;  %v2132_v45 = vadd.f32 %v2131_v49, %v1872_v23  ;;  %v1884_v41 = vadd.f32 %v1883_v48, %v4973_v11  ;;  %v1836_v23 = vadd.f32 %v4954_v14, %v5803_v44 }
 0x190   :  { %v3815_v32 = vpop.f32.mrf.mxu1  ;;  %v5111_v11 = vadd.f32 %v4970_v31, %v1842_v34  ;;  %v2178_v48 = vmax.f32 %v2114_v46, 0.0  ;;  %v2177_v0 = vmax.f32 %v2108_v4, 0.0  ;;  %v5130_v39 = vand.u32 4294901760, %v2179_v55 }
 0x191   :  { %v5098_v61 = vand.u32 4294901760, %v2182_v52  ;;  %v2150_v37 = vadd.f32 %v3815_v32, %v1890_v29  ;;  %v2181_v22 = vmax.f32 %v2132_v45, 0.0  ;;  %v5115_v29 = vand.u32 4294901760, %v2180_v33 }
 0x192   :  { %v2143_v43 = vpop.f32.mrf.mxu1  ;;  %v5128_v31 = vadd.f32 %v4986_v63, %v1836_v23  ;;  %v2176_v63 = vmax.f32 %v5111_v11, 0.0  ;;  %v5146_v16 = vand.u32 4294901760, %v2178_v48  ;;  %v5169_v4 = vsub.f32 %v2179_v55, %v5130_v39 }
 0x193   :  { %v2184_v49 = vmax.f32 %v2150_v37, 0.0  ;;  %v2144_v50 = vadd.f32 %v2143_v43, %v1884_v41  ;;  %v5113_v28 = vand.u32 4294901760, %v2181_v22  ;;  %v5118_v2 = vsub.f32 %v2182_v52, %v5098_v61  ;;  %v5804_v43 = vld [vmem:[#allocation5_spill] sm:$0xff] }
 0x194   :  { %v1824_v14 = vadd.f32 %v4934_v59, %v5804_v43  ;;  %v5143_v59 = vadd.f32 %v4942_v21, %v1830_v62  ;;  %5805 = vst [vmem:[#allocation9_spill] sm:$0xff] %v5146_v16  ;;  %v5150_v32 = vsub.f32 %v2180_v33, %v5115_v29  ;;  %v5806_v21 = vand.u32 4294901760, %v5071_v24 }
 0x195   :  { %v5120_v5 = vand.u32 4294901760, %v2184_v49  ;;  %v2183_v30 = vmax.f32 %v2144_v50, 0.0  ;;  %v5133_v46 = vsub.f32 %v2181_v22, %v5113_v28  ;;  %v5649_v1 = vand.u32 4294901760, %v5118_v2 }
 0x196   :  { %v2319_v62 = vsub.f32 %v5071_v24, %v5806_v21  ;;  %v5162_v26 = vadd.f32 %v4956_v13, %v1824_v14  ;;  %v2175_v34 = vmax.f32 %v5128_v31, 0.0  ;;  %v5165_v33 = vand.u32 4294901760, %v2177_v0 }
 0x197   :  { %v5136_v52 = vsub.f32 %v2184_v49, %v5120_v5  ;;  %v5138_v45 = vand.u32 4294901760, %v2183_v30  ;;  %3282 = vmatprep.subr.mxu0 %v5120_v5  ;;  %v5653_v13 = vand.u32 4294901760, %v5133_v46  ;;  %v2326_v50 = vsub.f32 %v5106_v60, %v5650_v42 }
 0x198   :  { %3283 = vmatpush3.msra.mxu0 %v5044_v20  ;;  %5807 = vst [vmem:[#allocation8_spill] sm:$0xff] %v5165_v33  ;;  %v2174_v44 = vmax.f32 %v5143_v59, 0.0  ;;  %v5181_v23 = vand.u32 4294901760, %v2176_v63  ;;  %v5184_v55 = vsub.f32 %v2178_v48, %v5146_v16  ;;  %v2445_v43 = vsub.f32 %v5118_v2, %v5649_v1 }
 0x199   :  { %v5153_v41 = vsub.f32 %v2183_v30, %v5138_v45  ;;  %3284 = vmatprep.subr.mxu0 %v5138_v45  ;;  %v5652_v37 = vand.u32 4294901760, %v5136_v52  ;;  %v5654_v14 = vand.u32 4294901760, %v5150_v32  ;;  %v5197_v31 = vadd.f32 %v4936_v6, %v5087_v25 }
 0x19a   :  { %3285 = vmatpush3.msra.mxu0 %v5092_v27  ;;  %5808 = vst [vmem:[#allocation4_spill] sm:$0xff] %v5181_v23  ;;  %v2173_v48 = vmax.f32 %v5162_v26, 0.0  ;;  %v5200_v59 = vand.u32 4294901760, %v2175_v34  ;;  %v2320_v21 = vand.u32 4294901760, %v2319_v62  ;;  %v2452_v42 = vsub.f32 %v5133_v46, %v5653_v13 }
 0x19b   :  { %3286 = vmatprep.subr.mxu0 %v5098_v61  ;;  %v2431_v22 = vsub.f32 %v5136_v52, %v5652_v37  ;;  %v5651_v49 = vand.u32 4294901760, %v5153_v41  ;;  %v5810_v25 = vand.u32 4294901760, %v5054_v9  ;;  %v5215_v62 = vand.u32 4294901760, %v2174_v44 }
 0x19c   :  { %3287 = vmatpush3.msra.mxu0 %v4978_v36  ;;  %5809 = vst [vmem:[#allocation6_spill] sm:$0xff] %v5200_v59  ;;  %v2327_v37 = vand.u32 4294901760, %v2326_v50  ;;  %v2459_v13 = vsub.f32 %v5150_v32, %v5654_v14  ;;  %v5231_v50 = vand.u32 4294901760, %v2173_v48  ;;  %v5815_v14 = vand.u32 4294901760, %v5169_v4 }
 0x19d   :  { %3288 = vmatprep.subr.mxu0 %v5113_v28  ;;  %v2432_v11 = vand.u32 4294901760, %v2431_v22  ;;  %v2438_v30 = vsub.f32 %v5153_v41, %v5651_v49  ;;  %v5204_v22 = vsub.f32 %v2177_v0, %v5165_v33  ;;  %v2340_v26 = vsub.f32 %v5054_v9, %v5810_v25  ;;  %5811 = vst [vmem:[#allocation7_spill] sm:$0xff] %v5215_v62  ;;  %v5812_v0 = vld [vmem:[#allocation16_spill] sm:$0xff] }
 0x19e   :  { %3289 = vmatpush3.msra.mxu0 %v5024_v15  ;;  %v2172_v49 = vmax.f32 %v5123_v18, 0.0  ;;  %v5813_v18 = vld [vmem:[#allocation14_spill] sm:$0xff]  ;;  %5814 = vst [vmem:[#allocation5_spill] sm:$0xff] %v5231_v50 }
 0x19f   :  { %3290 = vmatprep.subr.mxu0 %v5115_v29  ;;  %3317 = vmatprep.subr.mxu1 %v2432_v11  ;;  %v2439_v1 = vand.u32 4294901760, %v2438_v30  ;;  %v5219_v11 = vsub.f32 %v2176_v63, %v5181_v23  ;;  %v2446_v30 = vand.u32 4294901760, %v2445_v43  ;;  %v5228_v6 = vadd.f32 %v5813_v18, %v5060_v47 }
 0x1a0   :  { %3291 = vmatpush3.msra.mxu0 %v5812_v0  ;;  %3318 = vmatpush3.msra.mxu1 %v2320_v21  ;;  %v2171_v21 = vmax.f32 %v5197_v31, 0.0  ;;  %v2334_v63 = vand.u32 4294901760, %v5081_v17  ;;  %v2453_v43 = vand.u32 4294901760, %v2452_v42  ;;  %v2466_v47 = vsub.f32 %v5169_v4, %v5815_v14 }
 0x1a1   :  { %3292 = vmatprep.subr.mxu0 %v5130_v39  ;;  %3319 = vmatprep.subr.mxu1 %v2439_v1  ;;  %v5236_v1 = vsub.f32 %v2175_v34, %v5200_v59  ;;  %v5816_v18 = vand.u32 4294901760, %v5042_v7  ;;  %v5247_v17 = vand.u32 4294901760, %v2172_v49  ;;  %v5818_v34 = vld [vmem:[#allocation18_spill] sm:$0xff]  ;;  %v5251_v42 = vsub.f32 %v2174_v44, %v5215_v62 }
 0x1a2   :  { %3293 = vmatpush3.msra.mxu0 %v5001_v51  ;;  %3320 = vmatpush3.msra.mxu1 %v2327_v37  ;;  %v2170_v37 = vmax.f32 %v5076_v56, 0.0  ;;  %v2460_v14 = vand.u32 4294901760, %v2459_v13  ;;  %v5820_v56 = vand.u32 4294901760, %v5006_v10  ;;  %v2348_v44 = vand.u32 4294901760, %v5065_v54 }
 0x1a3   :  { %3294 = vmatprep.subr.mxu0 %v5146_v16  ;;  %3321 = vmatprep.subr.mxu1 %v2446_v30  ;;  %v2354_v25 = vsub.f32 %v5042_v7, %v5816_v18  ;;  %5817 = vst [vmem:[#allocation16_spill] sm:$0xff] %v5247_v17  ;;  %v2341_v16 = vand.u32 4294901760, %v2340_v26  ;;  %v5819_v30 = vand.u32 4294901760, %v5184_v55  ;;  %v5262_v26 = vand.u32 4294901760, %v2171_v21 }
 0x1a4   :  { %3295 = vmatpush3.msra.mxu0 %v5818_v34  ;;  %3322 = vmatpush3.msra.mxu1 %v2334_v63  ;;  %v2361_v51 = vsub.f32 %v5006_v10, %v5820_v56  ;;  %v2169_v63 = vmax.f32 %v5228_v6, 0.0  ;;  %v5267_v13 = vsub.f32 %v2173_v48, %v5231_v50  ;;  %v5278_v54 = vand.u32 4294901760, %v2170_v37  ;;  %v5824_v48 = vld [vmem:[#allocation17_spill] sm:$0xff]  ;;  %v5832_v6 = vld [vmem:[#allocation26_spill] sm:$0xff]  ;;  %v5841_v34 = vld [vmem:[#allocation11_spill] sm:$0xff] }
 0x1a5   :  { %3296 = vmatprep.subr.mxu0 %v5165_v33  ;;  %3323 = vmatprep.subr.mxu1 %v2453_v43  ;;  %v2473_v31 = vsub.f32 %v5184_v55, %v5819_v30  ;;  %5821 = vst [vmem:[#allocation14_spill] sm:$0xff] %v5262_v26  ;;  %v2467_v43 = vand.u32 4294901760, %v2466_v47  ;;  %v5822_v30 = vand.u32 4294901760, %v5204_v22  ;;  %v5282_v47 = vsub.f32 %v2172_v49, %v5247_v17 }
 0x1a6   :  { %3297 = vmatpush3.msra.mxu0 %v4982_v58  ;;  %3324 = vmatpush3.msra.mxu1 %v2341_v16  ;;  %v5823_v58 = vand.u32 4294901760, %v5022_v12  ;;  %v5826_v33 = vand.u32 4294901760, %v4999_v35  ;;  %v2362_v49 = vand.u32 4294901760, %v2361_v51  ;;  %v5840_v51 = vld [vmem:[#allocation27_spill] sm:$0xff] }
 0x1a7   :  { %3298 = vmatprep.subr.mxu0 %v5181_v23  ;;  %3325 = vmatprep.subr.mxu1 %v2460_v14  ;;  %v2480_v56 = vsub.f32 %v5204_v22, %v5822_v30  ;;  %v2355_v23 = vand.u32 4294901760, %v2354_v25  ;;  %v2474_v14 = vand.u32 4294901760, %v2473_v31  ;;  %v5825_v30 = vand.u32 4294901760, %v5219_v11 }
 0x1a8   :  { %v2368_v16 = vsub.f32 %v5022_v12, %v5823_v58  ;;  %3299 = vmatpush3.msra.mxu0 %v5824_v48  ;;  %3326 = vmatpush3.msra.mxu1 %v2348_v44  ;;  %v2375_v44 = vsub.f32 %v4999_v35, %v5826_v33  ;;  %v5293_v25 = vand.u32 4294901760, %v2169_v63  ;;  %v5297_v31 = vsub.f32 %v2171_v21, %v5262_v26 }
 0x1a9   :  { %3300 = vmatprep.subr.mxu0 %v5200_v59  ;;  %3327 = vmatprep.subr.mxu1 %v2467_v43  ;;  %v2487_v18 = vsub.f32 %v5219_v11, %v5825_v30  ;;  %v2481_v43 = vand.u32 4294901760, %v2480_v56  ;;  %v5827_v30 = vand.u32 4294901760, %v5236_v1  ;;  %v5828_v33 = vmax.f32 %v4889_v40, 0.0 }
 0x1aa   :  { %3301 = vmatpush3.msra.mxu0 %v5003_v53  ;;  %3328 = vmatpush3.msra.mxu1 %v2355_v23  ;;  %v5829_v23 = vand.u32 4294901760, %v5048_v38  ;;  %v2369_v56 = vand.u32 4294901760, %v2368_v16  ;;  %v5831_v40 = vand.u32 4294901760, %v5251_v42  ;;  %v5833_v53 = vld [vmem:[#allocation10_spill] sm:$0xff] }
 0x1ab   :  { %3302 = vmatprep.subr.mxu0 %v5215_v62  ;;  %3329 = vmatprep.subr.mxu1 %v2474_v14  ;;  %v2494_v58 = vsub.f32 %v5236_v1, %v5827_v30  ;;  %v5307_v59 = vsub.f32 %v5828_v33, %v5031_v8  ;;  %v5830_v62 = vld [vmem:[#allocation21_spill] sm:$0xff]  ;;  %v5315_v14 = vsub.f32 %v2170_v37, %v5278_v54  ;;  %v2488_v30 = vand.u32 4294901760, %v2487_v18 }
 0x1ac   :  { %v2382_v21 = vsub.f32 %v5048_v38, %v5829_v23  ;;  %3303 = vmatpush3.msra.mxu0 %v5830_v62  ;;  %3330 = vmatpush3.msra.mxu1 %v2362_v49  ;;  %v2501_v33 = vsub.f32 %v5251_v42, %v5831_v40  ;;  %v5834_v23 = vmax.f32 %v5833_v53, 0.0  ;;  %v5835_v49 = vld [vmem:[#allocation28_spill] sm:$0xff]  ;;  %v5836_v37 = vand.u32 4294901760, %v5036_v3 }
 0x1ad   :  { %3304 = vmatprep.subr.mxu0 %v5231_v50  ;;  %3331 = vmatprep.subr.mxu1 %v2481_v43  ;;  %v5837_v50 = vld [vmem:[#allocation23_spill] sm:$0xff]  ;;  %v2376_v18 = vand.u32 4294901760, %v2375_v44  ;;  %v5333_v43 = vsub.f32 %v2169_v63, %v5293_v25  ;;  %v2495_v40 = vand.u32 4294901760, %v2494_v58  ;;  %v5839_v53 = vand.u32 4294901760, %v5267_v13 }
 0x1ae   :  { %v5325_v48 = vsub.f32 %v5834_v23, %v5832_v6  ;;  %v2389_v62 = vsub.f32 %v5036_v3, %v5836_v37  ;;  %3305 = vmatpush3.msra.mxu0 %v5837_v50  ;;  %3332 = vmatpush3.msra.mxu1 %v2369_v56  ;;  %v5842_v37 = vmax.f32 %v5841_v34, 0.0  ;;  %v5844_v63 = vand.u32 4294901760, %v5039_v57 }
 0x1af   :  { %5838 = vst [vmem:[#allocation26_spill] sm:$0xff] %v5333_v43  ;;  %3306 = vmatprep.subr.mxu0 %v5247_v17  ;;  %3333 = vmatprep.subr.mxu1 %v2488_v30  ;;  %v2508_v23 = vsub.f32 %v5267_v13, %v5839_v53  ;;  %v5845_v17 = vld [vmem:[#allocation20_spill] sm:$0xff]  ;;  %v2383_v58 = vand.u32 4294901760, %v2382_v21  ;;  %v2502_v30 = vand.u32 4294901760, %v2501_v33  ;;  %v5846_v53 = vand.u32 4294901760, %v5282_v47 }
 0x1b0   :  { %v5343_v3 = vsub.f32 %v5842_v37, %v5840_v51  ;;  %v2396_v56 = vsub.f32 %v5039_v57, %v5844_v63  ;;  %3307 = vmatpush3.msra.mxu0 %v5845_v17  ;;  %3334 = vmatpush3.msra.mxu1 %v2376_v18  ;;  %v5847_v16 = vand.u32 4294901760, %v5835_v49  ;;  %v2390_v21 = vand.u32 4294901760, %v2389_v62  ;;  %v5848_v18 = vld [vmem:[#allocation15_spill] sm:$0xff] }
 0x1b1   :  { %3308 = vmatprep.subr.mxu0 %v5262_v26  ;;  %3335 = vmatprep.subr.mxu1 %v2495_v40  ;;  %v2515_v34 = vsub.f32 %v5282_v47, %v5846_v53  ;;  %v2509_v33 = vand.u32 4294901760, %v2508_v23  ;;  %v2309_v40 = vand.u32 4294901760, %v5848_v18  ;;  %v5849_v53 = vand.u32 4294901760, %v5297_v31 }
 0x1b2   :  { %5843 = vst [vmem:[#allocation10_spill] sm:$0xff] %v5343_v3  ;;  %v2403_v63 = vsub.f32 %v5835_v49, %v5847_v16  ;;  %3309 = vmatpush3.msra.mxu0 %v5031_v8  ;;  %3336 = vmatpush3.msra.mxu1 %v2383_v58  ;;  %v5682_v44 = vand.u32 4294901760, %v5333_v43  ;;  %v5681_v26 = vand.u32 4294901760, %v5343_v3  ;;  %v5850_v16 = vand.u32 4294901760, %v5307_v59 }
 0x1b3   :  { %3310 = vmatprep.subr.mxu0 %v5278_v54  ;;  %3337 = vmatprep.subr.mxu1 %v2502_v30  ;;  %v2522_v37 = vsub.f32 %v5297_v31, %v5849_v53  ;;  %v2397_v62 = vand.u32 4294901760, %v2396_v56  ;;  %v2516_v23 = vand.u32 4294901760, %v2515_v34  ;;  %v5851_v58 = vand.u32 4294901760, %v5315_v14 }
 0x1b4   :  { %v2410_v8 = vsub.f32 %v5307_v59, %v5850_v16  ;;  %3311 = vmatpush3.msra.mxu0 %v5832_v6  ;;  %3338 = vmatpush3.msra.mxu1 %v2390_v21  ;;  %v5852_v18 = vand.u32 4294901760, %v5325_v48  ;;  %v2404_v16 = vand.u32 4294901760, %v2403_v63  ;;  %v2536_v56 = vsub.f32 %v5333_v43, %v5682_v44  ;;  %v5869_v44 = vld [vmem:[#allocation13_spill] sm:$0xff] }
 0x1b5   :  { %3312 = vmatprep.subr.mxu0 %v5293_v25  ;;  %3339 = vmatprep.subr.mxu1 %v2509_v33  ;;  %v2529_v30 = vsub.f32 %v5315_v14, %v5851_v58  ;;  %v2523_v21 = vand.u32 4294901760, %v2522_v37  ;;  %v2424_v34 = vsub.f32 %v5343_v3, %v5681_v26  ;;  %v5855_v58 = vld [vmem:[#allocation24_spill] sm:$0xff]  ;;  %v5868_v26 = vld [vmem:[#allocation3_spill] sm:$0xff] }
 0x1b6   :  { %v2417_v53 = vsub.f32 %v5325_v48, %v5852_v18  ;;  %3313 = vmatpush3.msra.mxu0 %v5840_v51  ;;  %3340 = vmatpush3.msra.mxu1 %v2397_v62  ;;  %v2411_v33 = vand.u32 4294901760, %v2410_v8  ;;  %v2537_v63 = vand.u32 4294901760, %v2536_v56  ;;  %v5853_v8 = vld [vmem:[#allocation12_spill] sm:$0xff]  ;;  %v5857_v18 = vld [vmem:[#allocation30_spill] sm:$0xff] }
 0x1b7   :  { %2310 = vmatmul.mubr.f32.vlgmr.msra.gmra.mxu0 %v2309_v40  ;;  %3341 = vmatprep.subr.mxu1 %v2516_v23  ;;  %v2530_v62 = vand.u32 4294901760, %v2529_v30  ;;  %v2425_v40 = vand.u32 4294901760, %v2424_v34  ;;  %v5854_v23 = vld [vmem:[#allocation22_spill] sm:$0xff]  ;;  %v5856_v30 = vld [vmem:[#allocation9_spill] sm:$0xff]  ;;  %v5861_v56 = vld [vmem:[#allocation4_spill] sm:$0xff] }
 0x1b8   :  { %3352 = vmatprep.subr.mxu0 %v5136_v52  ;;  %3342 = vmatpush3.msra.mxu1 %v2404_v16  ;;  %v2418_v37 = vand.u32 4294901760, %v2417_v53  ;;  %v5858_v53 = vld [vmem:[#allocation18_spill] sm:$0xff]  ;;  %v5859_v16 = vld [vmem:[#allocation8_spill] sm:$0xff]  ;;  %v5862_v34 = vld [vmem:[#allocation17_spill] sm:$0xff] }
 0x1b9   :  { %3353 = vmatpush3.msra.mxu0 %v5071_v24  ;;  %3343 = vmatprep.subr.mxu1 %v2523_v21  ;;  %v5860_v21 = vld [vmem:[#allocation19_spill] sm:$0xff] }
 0x1ba   :  { %3354 = vmatprep.subr.mxu0 %v5153_v41  ;;  %3344 = vmatpush3.msra.mxu1 %v2411_v33  ;;  %v5863_v33 = vld [vmem:[#allocation6_spill] sm:$0xff] }
 0x1bb   :  { %3355 = vmatpush3.msra.mxu0 %v5106_v60  ;;  %3345 = vmatprep.subr.mxu1 %v2530_v62  ;;  %v5864_v62 = vld [vmem:[#allocation25_spill] sm:$0xff] }
 0x1bc   :  { %3356 = vmatprep.subr.mxu0 %v5118_v2  ;;  %3346 = vmatpush3.msra.mxu1 %v2418_v37  ;;  %v5865_v37 = vld [vmem:[#allocation7_spill] sm:$0xff] }
 0x1bd   :  { %3357 = vmatpush3.msra.mxu0 %v5009_v19  ;;  %3347 = vmatprep.subr.mxu1 %v2537_v63  ;;  %v5866_v63 = vld [vmem:[#allocation21_spill] sm:$0xff] }
 0x1be   :  { %3358 = vmatprep.subr.mxu0 %v5133_v46  ;;  %3348 = vmatpush3.msra.mxu1 %v2425_v40  ;;  %v5867_v40 = vld [vmem:[#allocation5_spill] sm:$0xff] }
 0x1bf   :  { %3359 = vmatpush3.msra.mxu0 %v5054_v9  ;;  %2542 = vmatmul.mubr.f32.vlgmr.msra.gmra.mxu1 %v5853_v8  ;;  %v5870_v8 = vld [vmem:[#allocation16_spill] sm:$0xff] }
 0x1c0   :  { %3360 = vmatprep.subr.mxu0 %v5150_v32  ;;  %3387 = vmatprep.subr.mxu1 %v5120_v5 }
 0x1c1   :  { %3361 = vmatpush3.msra.mxu0 %v5854_v23  ;;  %3388 = vmatpush3.msra.mxu1 %v5044_v20 }
 0x1c2   :  { %3362 = vmatprep.subr.mxu0 %v5169_v4  ;;  %3389 = vmatprep.subr.mxu1 %v5138_v45 }
 0x1c3   :  { %3363 = vmatpush3.msra.mxu0 %v5042_v7  ;;  %3390 = vmatpush3.msra.mxu1 %v5092_v27 }
 0x1c4   :  { %3364 = vmatprep.subr.mxu0 %v5184_v55  ;;  %3391 = vmatprep.subr.mxu1 %v5098_v61 }
 0x1c5   :  { %3365 = vmatpush3.msra.mxu0 %v5006_v10  ;;  %3392 = vmatpush3.msra.mxu1 %v4978_v36 }
 0x1c6   :  { %3366 = vmatprep.subr.mxu0 %v5204_v22  ;;  %3393 = vmatprep.subr.mxu1 %v5113_v28 }
 0x1c7   :  { %3367 = vmatpush3.msra.mxu0 %v5022_v12  ;;  %3394 = vmatpush3.msra.mxu1 %v5024_v15 }
 0x1c8   :  { %3368 = vmatprep.subr.mxu0 %v5219_v11  ;;  %3395 = vmatprep.subr.mxu1 %v5115_v29 }
 0x1c9   :  { %3369 = vmatpush3.msra.mxu0 %v4999_v35  ;;  %3396 = vmatpush3.msra.mxu1 %v5812_v0 }
 0x1ca   :  { %3370 = vmatprep.subr.mxu0 %v5236_v1  ;;  %3397 = vmatprep.subr.mxu1 %v5130_v39 }
 0x1cb   :  { %3371 = vmatpush3.msra.mxu0 %v5048_v38  ;;  %3398 = vmatpush3.msra.mxu1 %v5855_v58 }
 0x1cc   :  { %3372 = vmatprep.subr.mxu0 %v5251_v42  ;;  %3399 = vmatprep.subr.mxu1 %v5856_v30 }
 0x1cd   :  { %3373 = vmatpush3.msra.mxu0 %v5857_v18  ;;  %3400 = vmatpush3.msra.mxu1 %v5858_v53 }
 0x1ce   :  { %3374 = vmatprep.subr.mxu0 %v5267_v13  ;;  %3401 = vmatprep.subr.mxu1 %v5859_v16 }
 0x1cf   :  { %3375 = vmatpush3.msra.mxu0 %v5039_v57  ;;  %3402 = vmatpush3.msra.mxu1 %v5860_v21 }
 0x1d0   :  { %3376 = vmatprep.subr.mxu0 %v5282_v47  ;;  %3403 = vmatprep.subr.mxu1 %v5861_v56 }
 0x1d1   :  { %3377 = vmatpush3.msra.mxu0 %v5835_v49  ;;  %3404 = vmatpush3.msra.mxu1 %v5862_v34 }
 0x1d2   :  { %3378 = vmatprep.subr.mxu0 %v5297_v31  ;;  %3405 = vmatprep.subr.mxu1 %v5863_v33 }
 0x1d3   :  { %3379 = vmatpush3.msra.mxu0 %v5307_v59  ;;  %3406 = vmatpush3.msra.mxu1 %v5864_v62 }
 0x1d4   :  { %3380 = vmatprep.subr.mxu0 %v5315_v14  ;;  %3407 = vmatprep.subr.mxu1 %v5865_v37  ;;  %v5871_v37 = vand.u32 4294901760, %v5136_v52  ;;  %v5877_v52 = vand.u32 4294901760, %v5118_v2  ;;  %v5882_v2 = vand.u32 4294901760, %v5869_v44 }
 0x1d5   :  { %3381 = vmatpush3.msra.mxu0 %v5325_v48  ;;  %3408 = vmatpush3.msra.mxu1 %v5866_v63  ;;  %v5872_v63 = vand.u32 4294901760, %v5071_v24  ;;  %v5878_v24 = vand.u32 4294901760, %v5009_v19  ;;  %v5884_v19 = vand.u32 4294901760, %v5854_v23 }
 0x1d6   :  { %3382 = vmatprep.subr.mxu0 %v5333_v43  ;;  %3409 = vmatprep.subr.mxu1 %v5867_v40  ;;  %v5873_v43 = vld [vmem:[#allocation14_spill] sm:$0xff]  ;;  %v5875_v40 = vld [vmem:[#allocation29_spill] sm:$0xff] }
 0x1d7   :  { %3383 = vmatpush3.msra.mxu0 %v5343_v3  ;;  %2677 = vmatprep.mubr.f32.mxu0 %v5868_v26  ;;  %v5874_v3 = vand.u32 4294901760, %v5153_v41  ;;  %v5879_v41 = vand.u32 4294901760, %v5133_v46  ;;  %v5885_v46 = vand.u32 4294901760, %v5169_v4  ;;  %v5904_v4 = vld [vmem:[#allocation7_spill] sm:$0xff] }
 0x1d8   :  { %3410 = vmatpush3.msra.mxu1 %v5837_v50  ;;  %2680 = vmatmul.mubr.f32.vlgmr.msra.gmra.mxu0 %v5869_v44  ;;  %v5876_v50 = vand.u32 4294901760, %v5106_v60  ;;  %v5881_v60 = vand.u32 4294901760, %v5054_v9  ;;  %v5886_v9 = vand.u32 4294901760, %v5042_v7  ;;  %v5890_v7 = vand.u32 4294901760, %v5022_v12 }
 0x1d9   :  { %3411 = vmatprep.subr.mxu1 %v5870_v8  ;;  %3422 = vmatprep.subr.mxu0 %v5871_v37  ;;  %v5894_v12 = vand.u32 4294901760, %v5048_v38  ;;  %v5898_v38 = vand.u32 4294901760, %v5039_v57  ;;  %v5902_v57 = vand.u32 4294901760, %v5307_v59 }
 0x1da   :  { %3412 = vmatpush3.msra.mxu1 %v5845_v17  ;;  %3423 = vmatpush3.msra.mxu0 %v5872_v63 }
 0x1db   :  { %3413 = vmatprep.subr.mxu1 %v5873_v43  ;;  %3424 = vmatprep.subr.mxu0 %v5874_v3  ;;  %v5880_v3 = vand.u32 4294901760, %v5868_v26  ;;  %v5912_v26 = vld [vmem:[#allocation2_spill] sm:$0xff] }
 0x1dc   :  { %3414 = vmatpush3.msra.mxu1 %v5875_v40  ;;  %3425 = vmatpush3.msra.mxu0 %v5876_v50  ;;  %v5883_v50 = vand.u32 4294901760, %v5150_v32  ;;  %v5887_v32 = vand.u32 4294901760, %v5184_v55  ;;  %v5905_v55 = vand.u32 4294901760, %v5325_v48 }
 0x1dd   :  { %3415 = vmatprep.subr.mxu1 %v5278_v54  ;;  %3426 = vmatprep.subr.mxu0 %v5877_v52 }
 0x1de   :  { %3416 = vmatpush3.msra.mxu1 %v5832_v6  ;;  %3427 = vmatpush3.msra.mxu0 %v5878_v24 }
 0x1df   :  { %3417 = vmatprep.subr.mxu1 %v5293_v25  ;;  %3428 = vmatprep.subr.mxu0 %v5879_v41 }
 0x1e0   :  { %3418 = vmatpush3.msra.mxu1 %v5840_v51  ;;  %2784 = vmatprep.mubr.f32.mxu1 %v5880_v3 }
 0x1e1   :  { %3429 = vmatpush3.msra.mxu0 %v5881_v60  ;;  %2788 = vmatmul.mubr.f32.vlgmr.msra.gmra.mxu1 %v5882_v2 }
 0x1e2   :  { %3430 = vmatprep.subr.mxu0 %v5883_v50  ;;  %3457 = vmatprep.subr.mxu1 %v5120_v5  ;;  %v5888_v5 = vand.u32 4294901760, %v5006_v10  ;;  %v5892_v10 = vand.u32 4294901760, %v4999_v35  ;;  %v5896_v35 = vand.u32 4294901760, %v5857_v18 }
 0x1e3   :  { %3431 = vmatpush3.msra.mxu0 %v5884_v19  ;;  %3458 = vmatpush3.msra.mxu1 %v5044_v20  ;;  %v5889_v20 = vand.u32 4294901760, %v5204_v22  ;;  %v5906_v22 = vld [vmem:[#allocation21_spill] sm:$0xff] }
 0x1e4   :  { %3432 = vmatprep.subr.mxu0 %v5885_v46  ;;  %3459 = vmatprep.subr.mxu1 %v5138_v45  ;;  %v5903_v45 = vand.u32 4294901760, %v5315_v14 }
 0x1e5   :  { %3433 = vmatpush3.msra.mxu0 %v5886_v9  ;;  %3460 = vmatpush3.msra.mxu1 %v5092_v27  ;;  %v5891_v27 = vand.u32 4294901760, %v5219_v11 }
 0x1e6   :  { %3434 = vmatprep.subr.mxu0 %v5887_v32  ;;  %3461 = vmatprep.subr.mxu1 %v5098_v61  ;;  %v5897_v61 = vand.u32 4294901760, %v5267_v13  ;;  %v5913_v13 = vld [vmem:[#allocation23_spill] sm:$0xff] }
 0x1e7   :  { %3435 = vmatpush3.msra.mxu0 %v5888_v5  ;;  %3462 = vmatpush3.msra.mxu1 %v4978_v36  ;;  %v5893_v36 = vand.u32 4294901760, %v5236_v1  ;;  %v5909_v1 = vld [vmem:[#allocation5_spill] sm:$0xff] }
 0x1e8   :  { %3436 = vmatprep.subr.mxu0 %v5889_v20  ;;  %3463 = vmatprep.subr.mxu1 %v5113_v28  ;;  %v5899_v28 = vand.u32 4294901760, %v5282_v47  ;;  %v5914_v47 = vld [vmem:[#allocation12_spill] sm:$0xff] }
 0x1e9   :  { %3437 = vmatpush3.msra.mxu0 %v5890_v7  ;;  %3464 = vmatpush3.msra.mxu1 %v5024_v15  ;;  %v5895_v15 = vand.u32 4294901760, %v5251_v42  ;;  %v5910_v42 = vld [vmem:[#allocation10_spill] sm:$0xff] }
 0x1ea   :  { %3438 = vmatprep.subr.mxu0 %v5891_v27  ;;  %3465 = vmatprep.subr.mxu1 %v5115_v29  ;;  %v5900_v29 = vand.u32 4294901760, %v5835_v49  ;;  %v5911_v59 = vand.u32 4294901760, %v5910_v42 }
 0x1eb   :  { %3439 = vmatpush3.msra.mxu0 %v5892_v10  ;;  %3466 = vmatpush3.msra.mxu1 %v5812_v0  ;;  %v5907_v0 = vld [vmem:[#allocation26_spill] sm:$0xff] }
 0x1ec   :  { %3440 = vmatprep.subr.mxu0 %v5893_v36  ;;  %3467 = vmatprep.subr.mxu1 %v5130_v39  ;;  %v5901_v39 = vand.u32 4294901760, %v5297_v31  ;;  %v5908_v11 = vand.u32 4294901760, %v5907_v0 }
 0x1ed   :  { %3441 = vmatpush3.msra.mxu0 %v5894_v12  ;;  %3468 = vmatpush3.msra.mxu1 %v5855_v58 }
 0x1ee   :  { %3442 = vmatprep.subr.mxu0 %v5895_v15  ;;  %3469 = vmatprep.subr.mxu1 %v5856_v30  ;;  %v2190_v30 = vpop.permute.xlu0 %2189 }
 0x1ef   :  { %3443 = vmatpush3.msra.mxu0 %v5896_v35  ;;  %3470 = vmatpush3.msra.mxu1 %v5858_v53 }
 0x1f0   :  { %3444 = vmatprep.subr.mxu0 %v5897_v61  ;;  %3471 = vmatprep.subr.mxu1 %v5859_v16 }
 0x1f1   :  { %3445 = vmatpush3.msra.mxu0 %v5898_v38  ;;  %3472 = vmatpush3.msra.mxu1 %v5860_v21 }
 0x1f2   :  { %3446 = vmatprep.subr.mxu0 %v5899_v28  ;;  %3473 = vmatprep.subr.mxu1 %v5861_v56 }
 0x1f3   :  { %3447 = vmatpush3.msra.mxu0 %v5900_v29  ;;  %3474 = vmatpush3.msra.mxu1 %v5862_v34 }
 0x1f4   :  { %3448 = vmatprep.subr.mxu0 %v5901_v39  ;;  %3475 = vmatprep.subr.mxu1 %v5863_v33 }
 0x1f5   :  { %3449 = vmatpush3.msra.mxu0 %v5902_v57  ;;  %3476 = vmatpush3.msra.mxu1 %v5864_v62 }
 0x1f6   :  { %3450 = vmatprep.subr.mxu0 %v5903_v45  ;;  %3477 = vmatprep.subr.mxu1 %v5904_v4 }
 0x1f7   :  { %3451 = vmatpush3.msra.mxu0 %v5905_v55  ;;  %3478 = vmatpush3.msra.mxu1 %v5906_v22 }
 0x1f8   :  { %3452 = vmatprep.subr.mxu0 %v5908_v11  ;;  %3479 = vmatprep.subr.mxu1 %v5909_v1 }
 0x1f9   :  { %3453 = vmatpush3.msra.mxu0 %v5911_v59  ;;  %2954 = vmatprep.mubr.f32.mxu0 %v5912_v26 }
 0x1fa   :  { %3480 = vmatpush3.msra.mxu1 %v5913_v13  ;;  %2956 = vmatmul.mubr.f32.vlgmr.msra.gmra.mxu0 %v5914_v47 }
 0x1fb   :  { %3481 = vmatprep.subr.mxu1 %v5870_v8  ;;  %3058 = vmatprep.mubr.f32.mxu1 %v5912_v26 }
 0x1fc   :  { %3482 = vmatpush3.msra.mxu1 %v5845_v17 }
 0x1fd   :  { %3483 = vmatprep.subr.mxu1 %v5873_v43 }
 0x1fe   :  { %3484 = vmatpush3.msra.mxu1 %v5875_v40 }
 0x1ff   :  { %3485 = vmatprep.subr.mxu1 %v5278_v54 }
 0x200   :  { %3486 = vmatpush3.msra.mxu1 %v5832_v6 }
 0x201   :  { %3487 = vmatprep.subr.mxu1 %v5293_v25 }
 0x202   :  { %3488 = vmatpush3.msra.mxu1 %v5840_v51 }
 0x203   :  { %3060 = vmatmul.mubr.f32.vlgmr.msra.gmra.mxu1 %v5914_v47 }
 0x277   :  { %v3314_v48 = vpop.f32.mrf.mxu0 }
 0x279   :  { %v3315_v31 = vpop.f32.mrf.mxu0 }
 0x27a   :  { %v3316_v43 = vadd.f32 %v3315_v31, %v3314_v48 }
 0x27c   :  { %v2312_v18 = vadd.f32 %v3316_v43, %v2190_v30 }
 0x27f   :  { %v3349_v14 = vpop.f32.mrf.mxu1 }
 0x281   :  { %v3350_v44 = vpop.f32.mrf.mxu1 }
 0x282   :  { %v3351_v58 = vadd.f32 %v3350_v44, %v3349_v14 }
 0x284   :  { %v2544_v25 = vadd.f32 %v3351_v58, %v2312_v18 }
 0x298   :  { %v3384_v49 = vpop.f32.mrf.mxu0 }
 0x29a   :  { %v3385_v17 = vpop.f32.mrf.mxu0 }
 0x29b   :  { %v3386_v6 = vadd.f32 %v3385_v17, %v3384_v49 }
 0x29d   :  { %v2682_v51 = vadd.f32 %v3386_v6, %v2544_v25 }
 0x2a1   :  { %v3419_v8 = vpop.f32.mrf.mxu1 }
 0x2a3   :  { %v3420_v54 = vpop.f32.mrf.mxu1 }
 0x2a4   :  { %v3421_v16 = vadd.f32 %v3420_v54, %v3419_v8 }
 0x2a6   :  { %v2790_v34 = vadd.f32 %v3421_v16, %v2682_v51 }
 0x2ba   :  { %v3454_v23 = vpop.f32.mrf.mxu0 }
 0x2bc   :  { %v3455_v53 = vpop.f32.mrf.mxu0 }
 0x2bd   :  { %v3456_v21 = vadd.f32 %v3455_v53, %v3454_v23 }
 0x2bf   :  { %v2958_v62 = vadd.f32 %v3456_v21, %v2790_v34 }
 0x2c3   :  { %v3489_v56 = vpop.f32.mrf.mxu1 }
 0x2c5   :  { %v3490_v33 = vpop.f32.mrf.mxu1 }
 0x2c6   :  { %v3491_v37 = vadd.f32 %v3490_v33, %v3489_v56 }
 0x2c8   :  { %v3062_v63 = vadd.f32 %v3491_v37, %v2958_v62 }
 0x2ca   :  { %3066 = vst.msk [vmem:[%s5564_s5] sm:$0x3] %vm3065_vm2, %v3062_v63 }

</bundles_post_ra>
